<compile_context>
chip_gen: v5e
topology: v5e:2x2
jax: 0.10.0
libtpu: 0.0.40
codegen_flags: <defaults>
</compile_context>

<pallas_src>
import functools

import jax
import jax.numpy as jnp
from jax.experimental import pallas as pl
from jax.experimental.pallas import tpu as pltpu

LANE = 128
TILE_ROWS = 1024                      # (1024, 128) f32 tile = 512 KiB
NCORES = 2                            # leading "parallel" grid axis (v7x megacore)
MIN_KERNEL_ELEMS = TILE_ROWS * LANE   # below this, plain XLA is strictly faster


def _simse_sum_kernel(p_ref, r_ref, o_ref, acc_ref, *,
                      tiles_per_core, valid_rows, needs_mask):
    c = pl.program_id(0)  # parallel (core) axis
    t = pl.program_id(1)  # reduction (row-tile) axis

    @pl.when(t == 0)
    def _():
        acc_ref[...] = jnp.zeros_like(acc_ref)

    # Difference in f32; inputs may be bf16 (the upcast is free VPU filler for
    # a memory-bound kernel and halves HBM traffic vs. casting in the wrapper).
    d = r_ref[...].astype(jnp.float32) - p_ref[...].astype(jnp.float32)

    if needs_mask:
        # Rows past the true slab extent (ragged last tile, or a fully
        # out-of-range tile whose block index was clamped in the index_map)
        # must contribute zero.  `tiles_per_core` / `valid_rows` are static.
        g = c * tiles_per_core + t                    # global (unclamped) tile id
        row_ids = jax.lax.broadcasted_iota(jnp.int32, d.shape, 0)
        global_rows = g * TILE_ROWS + row_ids
        d = jnp.where(global_rows < valid_rows, d, 0.0)

    # Reduce only over the major axis (pure VPU vector adds; the (·, 8, 128)
    # reshape matches the native vreg tiling so it is a free view) into the
    # vreg-shaped accumulator; defer the cross-lane/sublane reduce to the host
    # wrapper so the hot loop has no XLU / scalar dependency chain.
    acc_ref[...] += d.reshape(TILE_ROWS // 8, 8, LANE).sum(axis=0)

    @pl.when(t == pl.num_programs(1) - 1)
    def _():
        o_ref[...] = acc_ref[...]


def simse(pred, real):
    """SIMSE loss: (sum(real - pred))**2 / numel**2 (returns float32 scalar)."""
    assert pred.shape == real.shape, "pred and real must have the same shape"
    n = int(pred.size)

    # ---- small-input fast path: pallas_call overhead would dominate --------
    if n < MIN_KERNEL_ELEMS:
        d = real.astype(jnp.float32) - pred.astype(jnp.float32)
        s = jnp.sum(d)
        return (s * s) / (jnp.float32(n) * jnp.float32(n))

    # ---- kernel path --------------------------------------------------------
    p = pred.reshape(-1)
    r = real.reshape(-1)
    if n % LANE != 0:
        # Rare fallback (non-multiple-of-128 sizes): minimal zero pad so the
        # lane-dense reshape exists.  Zero diffs contribute 0 to the sum.
        pad = LANE - (n % LANE)
        p = jnp.pad(p, (0, pad))
        r = jnp.pad(r, (0, pad))

    rows = p.shape[0] // LANE
    p2 = p.reshape(rows, LANE)   # free reshape of contiguous data
    r2 = r.reshape(rows, LANE)

    num_tiles = pl.cdiv(rows, TILE_ROWS)
    tiles_per_core = pl.cdiv(num_tiles, NCORES)
    needs_mask = (rows % TILE_ROWS != 0) or (num_tiles % NCORES != 0)

    def in_map(c, t):
        # Clamp so boundary / overhang tiles never index past the array; the
        # in-kernel row mask zeroes any duplicated or ragged contribution.
        return (jnp.minimum(c * tiles_per_core + t, num_tiles - 1), 0)

    kernel = functools.partial(
        _simse_sum_kernel,
        tiles_per_core=tiles_per_core,
        valid_rows=rows,
        needs_mask=needs_mask,
    )

    in_bytes = rows * LANE * (p2.dtype.itemsize + r2.dtype.itemsize)
    cost = pl.CostEstimate(
        flops=2 * rows * LANE,            # subtract + accumulate
        transcendentals=0,
        bytes_accessed=in_bytes + NCORES * 8 * LANE * 4,
    )

    partials = pl.pallas_call(
        kernel,
        out_shape=jax.ShapeDtypeStruct((NCORES, 8, LANE), jnp.float32),
        grid_spec=pltpu.PrefetchScalarGridSpec(
            num_scalar_prefetch=0,
            grid=(NCORES, tiles_per_core),
            in_specs=[
                pl.BlockSpec((TILE_ROWS, LANE), in_map),
                pl.BlockSpec((TILE_ROWS, LANE), in_map),
            ],
            out_specs=pl.BlockSpec((None, 8, LANE), lambda c, t: (c, 0, 0)),
            scratch_shapes=[pltpu.VMEM((8, LANE), jnp.float32)],
        ),
        compiler_params=pltpu.CompilerParams(
            dimension_semantics=("parallel", "arbitrary"),
        ),
        cost_estimate=cost,
    )(p2, r2)

    s = jnp.sum(partials)  # single final cross-lane reduce of 2*8*128 values
    return (s * s) / (jnp.float32(n) * jnp.float32(n))


def _simse_ref(pred, real):
    d = real.astype(jnp.float32) - pred.astype(jnp.float32)
    n = d.size
    s = jnp.sum(d)
    return (s * s) / (jnp.float32(n) * jnp.float32(n))


if __name__ == "__main__":
    key = jax.random.PRNGKey(0)
    k1, k2, k3, k4, k5, k6, k7, k8 = jax.random.split(key, 8)

    # 1) Small NCHW activations consistent with the module -> fast path.
    pred_s = jax.random.normal(k1, (2, 4, 16, 16), dtype=jnp.float32)
    real_s = pred_s + 0.05 + 0.1 * jax.random.normal(k2, (2, 4, 16, 16), jnp.float32)
    loss_s = simse(pred_s, real_s)
    jax.block_until_ready(loss_s)
    ref_s = _simse_ref(pred_s, real_s)
    assert jnp.allclose(loss_s, ref_s, rtol=1e-3, atol=1e-12), (loss_s, ref_s)

    # 2) Larger input -> Pallas kernel path (ragged last row-tile, both halves).
    pred_l = jax.random.normal(k3, (2, 4, 160, 160), dtype=jnp.float32)
    real_l = pred_l + 0.05 + 0.1 * jax.random.normal(k4, (2, 4, 160, 160), jnp.float32)
    loss_l = simse(pred_l, real_l)
    jax.block_until_ready(loss_l)
    ref_l = _simse_ref(pred_l, real_l)
    assert jnp.allclose(loss_l, ref_l, rtol=1e-3, atol=1e-12), (loss_l, ref_l)

    # 3) Odd number of row-tiles -> exercises the clamped, fully-masked tile.
    pred_o = jax.random.normal(k5, (3072, 128), dtype=jnp.float32)
    real_o = pred_o + 0.05 + 0.1 * jax.random.normal(k6, (3072, 128), jnp.float32)
    loss_o = simse(pred_o, real_o)
    jax.block_until_ready(loss_o)
    ref_o = _simse_ref(pred_o, real_o)
    assert jnp.allclose(loss_o, ref_o, rtol=1e-3, atol=1e-12), (loss_o, ref_o)

    # 4) bf16 inputs -> streamed as bf16, upcast inside the kernel.
    pred_b = jax.random.normal(k7, (2, 4, 160, 160), dtype=jnp.bfloat16)
    real_b = (pred_b.astype(jnp.float32) + 0.05
              + 0.1 * jax.random.normal(k8, (2, 4, 160, 160), jnp.float32)
              ).astype(jnp.bfloat16)
    loss_b = simse(pred_b, real_b)
    jax.block_until_ready(loss_b)
    ref_b = _simse_ref(pred_b, real_b)
    assert jnp.allclose(loss_b, ref_b, rtol=1e-3, atol=1e-12), (loss_b, ref_b)

    print("KERNEL_OK")
</pallas_src>

<mosaic_0001>
module attributes {stable_mosaic.version = 11 : i64} {
  func.func @_simse_sum_kernel(%arg0: i32, %arg1: i32, %arg2: memref<1024x128xf32, #tpu.memory_space<vmem>>, %arg3: memref<1024x128xf32, #tpu.memory_space<vmem>>, %arg4: memref<1x8x128xf32, #tpu.memory_space<vmem>>, %arg5: memref<8x128xf32, #tpu.memory_space<vmem>>) attributes {dimension_semantics = [#tpu.dimension_semantics<parallel>, #tpu.dimension_semantics<arbitrary>], iteration_bounds = array<i64: 2, 1>, scalar_prefetch = 0 : i64, scratch_operands = 1 : i64, tpu.core_type = #tpu.core_type<tc>, window_params = [{transform_indices = @transform_0, window_bounds = array<i64: 1024, 128>}, {transform_indices = @transform_1, window_bounds = array<i64: 1024, 128>}, {transform_indices = @transform_2, window_bounds = array<i64: 1, 8, 128>}]} {
    %c0_i32 = arith.constant 0 : i32
    %0 = arith.cmpi eq, %arg1, %c0_i32 : i32
    %1 = arith.extui %0 : i1 to i32
    %c0_i32_0 = arith.constant 0 : i32
    %2 = arith.cmpi ne, %1, %c0_i32_0 : i32
    scf.if %2 {
      %cst_11 = arith.constant 0.000000e+00 : f32
      %24 = vector.broadcast %cst_11 : f32 to vector<8x128xf32>
      %c0_12 = arith.constant 0 : index
      %c0_13 = arith.constant 0 : index
      %25 = vector.load %arg5[%c0_12, %c0_13] : memref<8x128xf32, #tpu.memory_space<vmem>>, vector<8x128xf32>
      tpu.vector_store %arg5[%c0_12, %c0_13], %24 {strides = array<i32>} : memref<8x128xf32, #tpu.memory_space<vmem>>, vector<8x128xf32>,
    } else {
    }
    %c0 = arith.constant 0 : index
    %c0_1 = arith.constant 0 : index
    %3 = vector.load %arg3[%c0, %c0_1] : memref<1024x128xf32, #tpu.memory_space<vmem>>, vector<1024x128xf32>
    %c0_2 = arith.constant 0 : index
    %c0_3 = arith.constant 0 : index
    %4 = vector.load %arg2[%c0_2, %c0_3] : memref<1024x128xf32, #tpu.memory_space<vmem>>, vector<1024x128xf32>
    %5 = arith.subf %3, %4 : vector<1024x128xf32>
    %c1_i32 = arith.constant 1 : i32
    %6 = arith.muli %arg0, %c1_i32 : i32
    %7 = arith.addi %6, %arg1 : i32
    %8 = tpu.iota {dimensions = array<i32: 0>} : vector<1024x128xi32>
    %c1024_i32 = arith.constant 1024 : i32
    %9 = arith.muli %7, %c1024_i32 : i32
    %10 = vector.broadcast %9 : i32 to vector<1024x128xi32>
    %11 = arith.addi %10, %8 : vector<1024x128xi32>
    %c1600_i32 = arith.constant 1600 : i32
    %12 = vector.broadcast %c1600_i32 : i32 to vector<1024x128xi32>
    %13 = arith.cmpi slt, %11, %12 : vector<1024x128xi32>
    %cst = arith.constant 0.000000e+00 : f32
    %14 = vector.broadcast %cst : f32 to vector<1024x128xf32>
    %15 = arith.select %13, %5, %14 : vector<1024x128xi1>, vector<1024x128xf32>
    %c0_4 = arith.constant 0 : index
    %c0_5 = arith.constant 0 : index
    %16 = vector.load %arg5[%c0_4, %c0_5] : memref<8x128xf32, #tpu.memory_space<vmem>>, vector<8x128xf32>
    %17 = vector.shape_cast %15 : vector<1024x128xf32> to vector<128x8x128xf32>
    %cst_6 = arith.constant dense<0.000000e+00> : vector<8x128xf32>
    %18 = vector.multi_reduction <add>, %17, %cst_6 [0] : vector<128x8x128xf32> to vector<8x128xf32>
    %19 = arith.addf %16, %18 : vector<8x128xf32>
    %c0_7 = arith.constant 0 : index
    %c0_8 = arith.constant 0 : index
    %20 = vector.load %arg5[%c0_7, %c0_8] : memref<8x128xf32, #tpu.memory_space<vmem>>, vector<8x128xf32>
    tpu.vector_store %arg5[%c0_7, %c0_8], %19 {strides = array<i32>} : memref<8x128xf32, #tpu.memory_space<vmem>>, vector<8x128xf32>,
    %c0_i32_9 = arith.constant 0 : i32
    %21 = arith.cmpi eq, %arg1, %c0_i32_9 : i32
    %22 = arith.extui %21 : i1 to i32
    %c0_i32_10 = arith.constant 0 : i32
    %23 = arith.cmpi ne, %22, %c0_i32_10 : i32
    scf.if %23 {
      %c0_11 = arith.constant 0 : index
      %c0_12 = arith.constant 0 : index
      %24 = vector.load %arg5[%c0_11, %c0_12] : memref<8x128xf32, #tpu.memory_space<vmem>>, vector<8x128xf32>
      %c0_13 = arith.constant 0 : index
      %c0_14 = arith.constant 0 : index
      %c0_15 = arith.constant 0 : index
      %25 = vector.load %arg4[%c0_13, %c0_14, %c0_15] : memref<1x8x128xf32, #tpu.memory_space<vmem>>, vector<1x8x128xf32>
      %26 = vector.shape_cast %25 : vector<1x8x128xf32> to vector<8x128xf32>
      %27 = vector.shape_cast %24 : vector<8x128xf32> to vector<1x8x128xf32>
      tpu.vector_store %arg4[%c0_13, %c0_14, %c0_15], %27 {strides = array<i32>} : memref<1x8x128xf32, #tpu.memory_space<vmem>>, vector<1x8x128xf32>,
    } else {
    }
    return
  }
  func.func @transform_0(%arg0: i32, %arg1: i32) -> (i32, i32) {
    %c1_i32 = arith.constant 1 : i32
    %0 = arith.muli %arg0, %c1_i32 : i32
    %1 = arith.addi %0, %arg1 : i32
    %c1_i32_0 = arith.constant 1 : i32
    %2 = arith.minsi %1, %c1_i32_0 : i32
    %c0_i32 = arith.constant 0 : i32
    %c0_i32_1 = arith.constant 0 : i32
    return %2, %c0_i32 : i32, i32
  }
  func.func @transform_1(%arg0: i32, %arg1: i32) -> (i32, i32) {
    %c1_i32 = arith.constant 1 : i32
    %0 = arith.muli %arg0, %c1_i32 : i32
    %1 = arith.addi %0, %arg1 : i32
    %c1_i32_0 = arith.constant 1 : i32
    %2 = arith.minsi %1, %c1_i32_0 : i32
    %c0_i32 = arith.constant 0 : i32
    %c0_i32_1 = arith.constant 0 : i32
    return %2, %c0_i32 : i32, i32
  }
  func.func @transform_2(%arg0: i32, %arg1: i32) -> (i32, i32, i32) {
    %c0_i32 = arith.constant 0 : i32
    %c0_i32_0 = arith.constant 0 : i32
    %c0_i32_1 = arith.constant 0 : i32
    return %arg0, %c0_i32, %c0_i32_0 : i32, i32, i32
  }
}

</mosaic_0001>

<bundles_post_ra>
// kernel: tpu_custom_call.1
= control target key start
LH: loop header
LB: loop body
LE: loop exit
PB: predicated region body
PF: predicated region fallthrough
CT: control target
= control target key end

     0   :  { %s2511_s0 = inlined_call_operand.hbm [shape: f32[1600,128], index: 0, kind: input, shape index: {}]   ;;  %s2512_s1 = inlined_call_operand.hbm [shape: f32[1600,128], index: 1, kind: input, shape index: {}]   ;;  %s2513_s2 = inlined_call_operand.hbm [shape: f32[2,8,128], index: 2, kind: output, shape index: {}]  }
   0x1   :  { %2517 = sst [smem:[#allocation14_spill]] %s2511_s0 }
   0x2   :  { %7 = vsyncpa [#allocation4], 0 }
   0x3   :  { %9 = vsyncpa [#allocation4 + $0x1], 0 }
   0x4   :  { %10 = vsyncpa [#allocation7], 0 }
   0x5   :  { %12 = vsyncpa [#allocation7 + $0x1], 0 }
   0x6   :  { %13 = vsyncpa [#allocation5], 0 }
   0x7   :  { %15 = vsyncpa [#allocation5 + $0x1], 0  ;;  %s1748_s9 = smov 0   ;;  %s1750_s10 = smov 0  }
   0x8   :  { %s1752_s11 = smov 0   ;;  %s1754_s12 = smov 0  }
   0x9   :  { %s1756_s13 = smov 0   ;;  %s1758_s14 = smov 0  }
   0xa   :  { %s1760_s15 = smov 0   ;;  %s1762_s16 = smov 0  }
   0xb   :  { %s1764_s17 = smov 0  }
   0xc LB: > { %2518 = sst [smem:[#allocation12_spill]] %s1721_s16  ;;  %s1423_s18 = sadd.s32 4294967295, %s1725_s17   ;;  %s1725_s17 = sphi %s1764_s17, %s21_s17   ;;  %s1721_s16 = sphi %s1762_s16, %s2529_s16   ;;  %s1717_s15 = sphi %s1760_s15, %s2528_s15   ;;  %s1713_s14 = sphi %s1758_s14, %s2535_s14   ;;  %s1709_s13 = sphi %s1756_s13, %s2534_s13   ;;  %s1705_s12 = sphi %s1754_s12, %s2533_s12   ;;  %s1701_s11 = sphi %s1752_s11, %s2532_s11   ;;  %s1697_s10 = sphi %s1750_s10, %s2531_s10   ;;  %s1693_s9 = sphi %s1748_s9, %s2530_s9  }
   0xd   : > { %s1424_s19 = sadd.s32 4294967294, %s1725_s17   ;;  %s33_s20 = sadd.s32 1, %s1721_s16 }
   0xe   : > { %p38_p0 = scmp.lt.s32.totalorder %s1721_s16, 1  ;;  %p35_p1 = scmp.ge.s32.totalorder %s33_s20, 2 }
   0xf   : > { %s46_s21 = sadd.s32 1, %s1713_s14  ;;  %p53_p2 = scmp.ne.s32.totalorder %s1713_s14, %s1709_s13 }
  0x10   : > { %s1797_s22 = scalar_select %p38_p0, %s1721_s16, 1 }
  0x11   : > { %s2537_s20 = smov (%p35_p1, %s33_s20), 0  ;;  %p54_p3 = scmp.eq.s32.totalorder %s1725_s17, 0 }
  0x12   : > { %2519 = sst [smem:[#allocation13_spill]] %s2537_s20  ;;  %p41_p4 = scmp.lt.s32.totalorder %s2537_s20, 1 }
  0x13   : > { %p59_p5 = scmp.ne.s32.totalorder %s1709_s13, %s1705_s12  ;;  %p1806_p6 = por %p54_p3, %p53_p2 }
  0x14   : > { %p60_p7 = scmp.eq.s32.totalorder %s1423_s18, 0  ;;  %s101_s26 = ssub.s32 %s1721_s16, %s2537_s20 }
  0x15   : > { %s42_s24 = scalar_select %p41_p4, %s2537_s20, 1 }
  0x16   : > { %p1811_p8 = por %p60_p7, %p59_p5  ;;  %p102_p9 = scmp.eq.s32.totalorder %s101_s26, 0 }
  0x17   : > { %s43_s27 = ssub.s32 %s1797_s22, %s42_s24  ;;  %s104_s28 = sadd.s32 1, %s1701_s11 }
  0x18   : > { %p44_p10 = scmp.eq.s32.totalorder %s43_s27, 0  ;;  %p114_p11 = scmp.ne.s32.totalorder %s1701_s11, %s1697_s10 }
  0x19   : > { %s1820_s29 = scalar_select %p102_p9, %s1701_s11, %s104_s28  }
  0x1a   : > { %s1823_s30 = scalar_select %p44_p10, %s1713_s14, %s46_s21  }
  0x1b   : > { %p115_p12 = scmp.eq.s32.totalorder %s1423_s18, 1  ;;  %p120_p13 = scmp.ne.s32.totalorder %s1697_s10, %s1693_s9 }
  0x1c   : > { %p121_p0 = scmp.eq.s32.totalorder %s1424_s19, 1  ;;  %p1426_p3 = scmp.ge.s32.totalorder %s1725_s17, 2 }
  0x1d   : > { %p1829_p1 = por %p115_p12, %p114_p11 }
  0x1e   : > { %p1833_p2 = por %p121_p0, %p120_p13  ;;  %137 = sbr.rel (%p1426_p3) target bundleno = 114 (0x72), region = 16 }
  0x23   : > { %140 = sbr.rel (!%p1806_p6) target bundleno = 78 (0x4e), region = 20  ;;  %s141_s5 = sand.u32 (%p1806_p6), 1, %s1713_s14  }
  0x24   : > { %s1428_s6 = sshll.u32 (%p1806_p6), %s1797_s22, 7  ;;  %s1427_s7 = sshll.u32 (%p1806_p6), %s141_s5, 10 }
  0x25   : > { %s150_s8 = ssub.s32 (%p1806_p6), 200, %s1428_s6  ;;  %s1847_s21 = scalar_lea.sflag (%p1806_p6), [#allocation4], %s141_s5 }
  0x26   : > { %p151_p4 = scmp.lt.s32.totalorder (%p1806_p6), %s150_s8, 128  ;;  %s145_s24 = scalar_lea.vmem (%p1806_p6), [#allocation3], %s1427_s7 }
  0x28   : > { %s2539_s8 = smov (!%p151_p4, %s150_s8), 128 }
  0x29   : > { %s1429_s12 = sshll.u32 %s2539_s8, 3 }
  0x2a   : > { %s154_s18 = ssub.s32 1024, %s1429_s12 }
  0x2b   : > { %s155_s19 = sshll.u32 %s154_s18, 4 }
  0x2c   : > { %156 = vsyncadd %s1847_s21, %s155_s19  ;;  %p1850_p5 = scmp.ne.s32.totalorder %s1429_s12, 0  ;;  %s1450_s27 = sshll.u32 %s1797_s22, 10 }
  0x2d   : > { %s2525_s0 = sld [smem:[#allocation14_spill]]  ;;  %s1858_s16 = sshll.u32 %s145_s24, 4  ;;  %s164_s16 = int_to_ptr.vmem [resolvable:$true] %s1858_s16 }
  0x2e   : > { %s2516_s7 = sshll.u32 %s2539_s8, 7 }
  0x2f   : > { %s1539_s12 = sshrl.u32 %s2516_s7, 4 }
  0x33   : > { %s159_s20 = scalar_lea.hbm %s2525_s0, %s1450_s27  ;;  %s1548_s24 = scalar_lea.hbm %s2525_s0, 1600 }
  0x34   : > { %s161_s5 = sshll.u32 %s159_s20, 4  ;;  %s1861_s5 = int_to_ptr.hbm [resolvable:$true] %s161_s5 }
  0x35   : > { %s1537_s18 = sshra.s32 %s1861_s5, 4  ;;  %s1538_s18 = int_to_ptr.hbm [resolvable:$true] %s1537_s18 }
  0x36   : > { %s1544_s19 = scalar_lea.hbm %s1538_s18, %s1539_s12 }
  0x37   : > { %p1545_p7 = scmp.ne.s32.totalorder %s1538_s18, %s1544_s19  ;;  %p1550_p11 = scmp.lt.s32.totalorder %s1548_s24, %s1544_s19 }
  0x39   : > { %p1546_p9 = pnand %p1545_p7, %p1850_p5 }
  0x3b   : > { %p1547_p10 = pneg %p1546_p9 }
  0x3d   : > { %p1552_p12 = pnand %p1550_p11, %p1547_p10 }
  0x3f   : > { %1555 = shalt.err (!%p1552_p12)
}
  0x40   : > { %s1556_s20 = sshra.s32 %s164_s16, 4  ;;  %s1727_s18 = smov [#allocation3]   ;;  %s1557_s20 = int_to_ptr.vmem [resolvable:$true] %s1556_s20 }
  0x41   : > { %s1563_s6 = scalar_lea.vmem %s1557_s20, %s1539_s12  ;;  %s1567_s7 = scalar_lea.vmem %s1727_s18, 2048 }
  0x42   : > { %p1564_p13 = scmp.ne.s32.totalorder %s1557_s20, %s1563_s6  ;;  %p1569_p7 = scmp.lt.s32.totalorder %s1567_s7, %s1563_s6 }
  0x44   : > { %p1565_p0 = pnand %p1564_p13, %p1850_p5 }
  0x46   : > { %p1566_p4 = pneg %p1565_p0 }
  0x48   : > { %p1571_p9 = pnand %p1569_p7, %p1566_p4 }
  0x4a   : > { %1574 = shalt.err (!%p1571_p9)
}
  0x4b   : > { %s1728_s28 = smov 128   ;;  %s1729_s19 = smov 8  }
  0x4c   : > { %s2526_s27 = sshll.u32 %s2539_s8, 7 }
  0x4d   : > { %169 = dma.hbm_to_vmem [thread:$0]  (%p1850_p5), %s1861_s5, %s2526_s27, %s164_s16, %s1847_s21, %s1728_s28, %s1728_s28, %s1729_s19  }
  0x4e PF: > { %172 = sbr.rel (!%p1806_p6) target bundleno = 114 (0x72), region = 24  ;;  %s173_s7 = sand.u32 (%p1806_p6), 1, %s1713_s14  }
  0x4f   : > { %s1435_s12 = sshll.u32 (%p1806_p6), %s1797_s22, 7  ;;  %s1434_s24 = sshll.u32 (%p1806_p6), %s173_s7, 10 }
  0x50   : > { %s182_s20 = ssub.s32 (%p1806_p6), 200, %s1435_s12  ;;  %s1891_s0 = scalar_lea.sflag (%p1806_p6), [#allocation7], %s173_s7 }
  0x51   : > { %p183_p10 = scmp.lt.s32.totalorder (%p1806_p6), %s182_s20, 128  ;;  %s177_s16 = scalar_lea.vmem (%p1806_p6), [#allocation6], %s1434_s24 }
  0x53   : > { %s2541_s20 = smov (!%p183_p10, %s182_s20), 128 }
  0x54   : > { %s1436_s6 = sshll.u32 %s2541_s20, 3 }
  0x55   : > { %s186_s18 = ssub.s32 1024, %s1436_s6 }
  0x56   : > { %s187_s26 = sshll.u32 %s186_s18, 4 }
  0x57   : > { %188 = vsyncadd %s1891_s0, %s187_s26  ;;  %p1894_p6 = scmp.ne.s32.totalorder %s1436_s6, 0  ;;  %s1451_s8 = sshll.u32 %s1797_s22, 10 }
  0x58   : > { %s191_s28 = scalar_lea.hbm %s2512_s1, %s1451_s8  ;;  %s1902_s19 = sshll.u32 %s177_s16, 4  ;;  %s196_s19 = int_to_ptr.vmem [resolvable:$true] %s1902_s19 }
  0x59   : > { %s193_s27 = sshll.u32 %s191_s28, 4  ;;  %s1440_s7 = sshll.u32 %s2541_s20, 7  ;;  %s1905_s27 = int_to_ptr.hbm [resolvable:$true] %s193_s27 }
  0x5a   : > { %s1576_s12 = sshra.s32 %s1905_s27, 4  ;;  %s1578_s24 = sshrl.u32 %s1440_s7, 4  ;;  %s1577_s12 = int_to_ptr.hbm [resolvable:$true] %s1576_s12 }
  0x5b   : > { %s1583_s6 = scalar_lea.hbm %s1577_s12, %s1578_s24  ;;  %s1587_s26 = scalar_lea.hbm %s2512_s1, 1600 }
  0x5c   : > { %p1584_p5 = scmp.ne.s32.totalorder %s1577_s12, %s1583_s6  ;;  %p1589_p13 = scmp.lt.s32.totalorder %s1587_s26, %s1583_s6 }
  0x5e   : > { %p1585_p11 = pnand %p1584_p5, %p1894_p6 }
  0x60   : > { %p1586_p12 = pneg %p1585_p11 }
  0x62   : > { %p1591_p0 = pnand %p1589_p13, %p1586_p12 }
  0x64   : > { %1594 = shalt.err (!%p1591_p0)
}
  0x65   : > { %s1595_s16 = sshra.s32 %s196_s19, 4  ;;  %s1730_s21 = smov [#allocation6]   ;;  %s1596_s16 = int_to_ptr.vmem [resolvable:$true] %s1595_s16 }
  0x66   : > { %s1602_s8 = scalar_lea.vmem %s1596_s16, %s1578_s24  ;;  %s1606_s5 = scalar_lea.vmem %s1730_s21, 2048 }
  0x67   : > { %p1603_p4 = scmp.ne.s32.totalorder %s1596_s16, %s1602_s8  ;;  %p1608_p10 = scmp.lt.s32.totalorder %s1606_s5, %s1602_s8 }
  0x69   : > { %p1604_p7 = pnand %p1603_p4, %p1894_p6 }
  0x6b   : > { %p1605_p9 = pneg %p1604_p7 }
  0x6d   : > { %p1610_p5 = pnand %p1608_p10, %p1605_p9 }
  0x6f   : > { %1613 = shalt.err (!%p1610_p5)
}
  0x70   : > { %s1731_s28 = smov 128   ;;  %s1732_s12 = smov 8  }
  0x71   : > { %201 = dma.hbm_to_vmem [thread:$0]  (%p1894_p6), %s1905_s27, %s1440_s7, %s196_s19, %s1891_s0, %s1731_s28, %s1731_s28, %s1732_s12  }
  0x72 PF: > { %p1441_p11 = scmp.ge.s32.totalorder %s1725_s17, 1  ;;  %p203_p12 = scmp.lt.s32.totalorder %s1725_s17, 3 }
  0x74   : > { %p204_p13 = pnand %p1441_p11, %p203_p12 }
  0x75   : > { %s209_s24 = sand.u32 (!%p204_p13), 1, %s1709_s13  }
  0x76   : > { %207 = sbr.rel (%p204_p13) target bundleno = 393 (0x189), region = 28  ;;  %s1442_s6 = sshll.u32 (!%p204_p13), %s209_s24, 10 }
  0x77   : > { %s210_s22 = scalar_lea.sflag (!%p204_p13), [#allocation4], %s209_s24  ;;  %s1931_s18 = scalar_lea.vmem (!%p204_p13), [#allocation3], %s1442_s6 }
  0x7b   : > { %1680 = dma.done.wait (%p1811_p8), %s210_s22, 16384  }
  0x7c   : > { %1682 = vsyncadd (%p1811_p8), %s210_s22, 4294950912  ;;  %s220_s0 = scalar_lea.sflag [#allocation7], %s209_s24  ;;  %s1937_s20 = scalar_lea.vmem [#allocation6], %s1442_s6 }
  0x7d   : > { %1684 = dma.done.wait (%p1811_p8), %s220_s0, 16384  }
  0x7e   : > { %1686 = vsyncadd (%p1811_p8), %s220_s0, 4294950912  ;;  %v656_v0 = vlaneseq  ;;  %s1445_s23 = sshll.u32 %s1717_s15, 10  ;;  %v271_v5 = vld [vmem:[%s1937_s20] sm:$0xff]  ;;  %v272_v6 = vld [vmem:[%s1937_s20 + $0x8] sm:$0xff]  ;;  %s247_s25 = sand.u32 1, %s1697_s10  }
  0x7f   : > { %v1947_v3 = vstv %s1445_s23  ;;  %v399_v7 = vld [vmem:[%s1931_s18] sm:$0xff]  ;;  %v400_v8 = vld [vmem:[%s1931_s18 + $0x8] sm:$0xff]  ;;  %v273_v12 = vld [vmem:[%s1937_s20 + $0x10] sm:$0xff]  ;;  %s1444_s19 = sshll.u32 %s247_s25, 3  ;;  %s1447_s27 = sshll.u32 %s1717_s15, 3 }
  0x80   : > { %v1943_v1 = vshrl.u32 %v656_v0, 7  ;;  %v401_v13 = vld [vmem:[%s1931_s18 + $0x10] sm:$0xff]  ;;  %v527_v16 = vsub.f32 %v271_v5, %v399_v7  ;;  %v528_v17 = vsub.f32 %v272_v6, %v400_v8  ;;  %v274_v18 = vld [vmem:[%s1937_s20 + $0x18] sm:$0xff]  ;;  %v275_v23 = vld [vmem:[%s1937_s20 + $0x20] sm:$0xff]  ;;  %s1317_s16 = scalar_lea.hbm %s2513_s2, %s1447_s27  ;;  %s249_s8 = scalar_lea.vmem [#allocation8], %s1444_s19 }
  0x81   : > { %v402_v19 = vld [vmem:[%s1931_s18 + $0x18] sm:$0xff]  ;;  %v529_v22 = vsub.f32 %v273_v12, %v401_v13  ;;  %v403_v24 = vld [vmem:[%s1931_s18 + $0x20] sm:$0xff]  ;;  %v276_v30 = vld [vmem:[%s1937_s20 + $0x28] sm:$0xff]  ;;  %s1319_s21 = sshll.u32 %s249_s8, 4  ;;  %s1321_s5 = sshll.u32 %s1317_s16, 4  ;;  %s1320_s21 = int_to_ptr.vmem [resolvable:$true] %s1319_s21  ;;  %s1322_s5 = int_to_ptr.hbm [resolvable:$true] %s1321_s5 }
  0x82   : > { %v658_v2 = vadd.s32 8, %v1943_v1  ;;  %v659_v4 = vadd.s32 16, %v1943_v1  ;;  %v660_v9 = vadd.s32 24, %v1943_v1  ;;  %v787_v10 = vadd.s32 %v1947_v3, %v1943_v1  ;;  %v404_v31 = vld [vmem:[%s1931_s18 + $0x28] sm:$0xff]  ;;  %v277_v36 = vld [vmem:[%s1937_s20 + $0x30] sm:$0xff]  ;;  %v278_v43 = vld [vmem:[%s1937_s20 + $0x38] sm:$0xff] }
  0x83   : > { %v661_v14 = vadd.s32 32, %v1943_v1  ;;  %v662_v20 = vadd.s32 40, %v1943_v1  ;;  %v663_v25 = vadd.s32 48, %v1943_v1  ;;  %v530_v27 = vsub.f32 %v274_v18, %v402_v19  ;;  %v405_v37 = vld [vmem:[%s1931_s18 + $0x30] sm:$0xff]  ;;  %v406_v44 = vld [vmem:[%s1931_s18 + $0x38] sm:$0xff]  ;;  %v279_v50 = vld [vmem:[%s1937_s20 + $0x40] sm:$0xff] }
  0x84   : > { %v788_v11 = vadd.s32 %v1947_v3, %v658_v2  ;;  %v789_v15 = vadd.s32 %v1947_v3, %v659_v4  ;;  %v790_v21 = vadd.s32 %v1947_v3, %v660_v9  ;;  %vm915_vm0 = vcmp.lt.s32.totalorder %v787_v10, 1600  ;;  %v407_v51 = vld [vmem:[%s1931_s18 + $0x40] sm:$0xff]  ;;  %v280_v57 = vld [vmem:[%s1937_s20 + $0x48] sm:$0xff]  ;;  %v281_v0 = vld [vmem:[%s1937_s20 + $0x50] sm:$0xff]  ;;  %s1307_s15 = scalar_lea.sflag [#allocation5], %s247_s25  ;;  %s1629_s28 = sshra.s32 %s1322_s5, 4  ;;  %s1630_s28 = int_to_ptr.hbm [resolvable:$true] %s1629_s28 }
  0x85   : > { %v791_v26 = vadd.s32 %v1947_v3, %v661_v14  ;;  %v1043_v28 = vsel %vm915_vm0, %v527_v16, 0.0  ;;  %v664_v32 = vadd.s32 56, %v1943_v1  ;;  %v792_v33 = vadd.s32 %v1947_v3, %v662_v20  ;;  %v408_v58 = vld [vmem:[%s1931_s18 + $0x48] sm:$0xff]  ;;  %v409_v2 = vld [vmem:[%s1931_s18 + $0x50] sm:$0xff]  ;;  %v282_v9 = vld [vmem:[%s1937_s20 + $0x58] sm:$0xff]  ;;  %s1631_s12 = scalar_lea.hbm %s1630_s28, 8  ;;  %p1636_p4 = scmp.lt.s32.totalorder %s1630_s28, %s2513_s2 }
  0x86   : > { %vm916_vm1 = vcmp.lt.s32.totalorder %v788_v11, 1600  ;;  %vm917_vm2 = vcmp.lt.s32.totalorder %v789_v15, 1600  ;;  %vm918_vm3 = vcmp.lt.s32.totalorder %v790_v21, 1600  ;;  %v531_v34 = vsub.f32 %v275_v23, %v403_v24  ;;  %v410_v10 = vld [vmem:[%s1931_s18 + $0x58] sm:$0xff]  ;;  %v283_v16 = vld [vmem:[%s1937_s20 + $0x60] sm:$0xff]  ;;  %v284_v23 = vld [vmem:[%s1937_s20 + $0x68] sm:$0xff]  ;;  %p1632_p8 = scmp.ne.s32.totalorder %s1630_s28, %s1631_s12 }
  0x87   : > { %v1044_v29 = vsel %vm916_vm1, %v528_v17, 0.0  ;;  %v1045_v35 = vsel %vm917_vm2, %v529_v22, 0.0  ;;  %v665_v38 = vadd.s32 64, %v1943_v1  ;;  %v793_v39 = vadd.s32 %v1947_v3, %v663_v25  ;;  %v411_v17 = vld [vmem:[%s1931_s18 + $0x60] sm:$0xff]  ;;  %v412_v24 = vld [vmem:[%s1931_s18 + $0x68] sm:$0xff]  ;;  %s1635_s22 = scalar_lea.hbm %s2513_s2, 16 }
  0x88   : > { %vm919_vm4 = vcmp.lt.s32.totalorder %v791_v26, 1600  ;;  %v1172_v40 = vadd.f32 %v1044_v29, %v1043_v28  ;;  %v532_v41 = vsub.f32 %v276_v30, %v404_v31  ;;  %v1046_v42 = vsel %vm918_vm3, %v530_v27, 0.0  ;;  %v285_v30 = vld [vmem:[%s1937_s20 + $0x70] sm:$0xff]  ;;  %p1633_p6 = pnand %p1632_p8, %p1829_p1  ;;  %p1637_p7 = scmp.lt.s32.totalorder %s1635_s22, %s1631_s12 }
  0x89   : > { %v666_v45 = vadd.s32 72, %v1943_v1  ;;  %v794_v46 = vadd.s32 %v1947_v3, %v664_v32  ;;  %vm920_vm5 = vcmp.lt.s32.totalorder %v792_v33, 1600  ;;  %v533_v48 = vsub.f32 %v277_v36, %v405_v37  ;;  %v413_v31 = vld [vmem:[%s1931_s18 + $0x70] sm:$0xff]  ;;  %v286_v37 = vld [vmem:[%s1937_s20 + $0x78] sm:$0xff] }
  0x8a   : > { %v1173_v47 = vadd.f32 %v1172_v40, %v1045_v35  ;;  %v1047_v49 = vsel %vm919_vm4, %v531_v34, 0.0  ;;  %v667_v52 = vadd.s32 80, %v1943_v1  ;;  %v795_v53 = vadd.s32 %v1947_v3, %v665_v38  ;;  %v414_v38 = vld [vmem:[%s1931_s18 + $0x78] sm:$0xff]  ;;  %p1634_p0 = pneg %p1633_p6  ;;  %p1638_p9 = por %p1637_p7, %p1636_p4 }
  0x8b   : > { %vm921_vm6 = vcmp.lt.s32.totalorder %v793_v39, 1600  ;;  %v534_v55 = vsub.f32 %v278_v43, %v406_v44  ;;  %v1048_v56 = vsel %vm920_vm5, %v532_v41, 0.0  ;;  %v668_v59 = vadd.s32 88, %v1943_v1  ;;  %v287_v44 = vld [vmem:[%s1937_s20 + $0x80] sm:$0xff] }
  0x8c   : > { %v1174_v54 = vadd.f32 %v1173_v47, %v1046_v42  ;;  %v796_v60 = vadd.s32 %v1947_v3, %v666_v45  ;;  %vm922_vm7 = vcmp.lt.s32.totalorder %v794_v46, 1600  ;;  %v535_v62 = vsub.f32 %v279_v50, %v407_v51  ;;  %v415_v45 = vld [vmem:[%s1931_s18 + $0x80] sm:$0xff]  ;;  %v288_v51 = vld [vmem:[%s1937_s20 + $0x88] sm:$0xff]  ;;  %p1639_p10 = pnand %p1638_p9, %p1634_p0 }
  0x8d   : > { %v1049_v63 = vsel %vm921_vm6, %v533_v48, 0.0  ;;  %v669_v4 = vadd.s32 96, %v1943_v1  ;;  %v797_v5 = vadd.s32 %v1947_v3, %v667_v52  ;;  %vm923_vm8 = vcmp.lt.s32.totalorder %v795_v53, 1600  ;;  %v416_v52 = vld [vmem:[%s1931_s18 + $0x88] sm:$0xff] }
  0x8e   : > { %v1175_v61 = vadd.f32 %v1174_v54, %v1047_v49  ;;  %v536_v7 = vsub.f32 %v280_v57, %v408_v58  ;;  %v1050_v8 = vsel %vm922_vm7, %v534_v55, 0.0  ;;  %v670_v11 = vadd.s32 104, %v1943_v1  ;;  %v289_v58 = vld [vmem:[%s1937_s20 + $0x90] sm:$0xff] }
  0x8f   : > { %v798_v12 = vadd.s32 %v1947_v3, %v668_v59  ;;  %vm924_vm9 = vcmp.lt.s32.totalorder %v796_v60, 1600  ;;  %v537_v14 = vsub.f32 %v281_v0, %v409_v2  ;;  %v1051_v15 = vsel %vm923_vm8, %v535_v62, 0.0  ;;  %v417_v59 = vld [vmem:[%s1931_s18 + $0x90] sm:$0xff]  ;;  %v290_v2 = vld [vmem:[%s1937_s20 + $0x98] sm:$0xff] }
  0x90   : > { %v1176_v6 = vadd.f32 %v1175_v61, %v1048_v56  ;;  %v671_v18 = vadd.s32 112, %v1943_v1  ;;  %v799_v19 = vadd.s32 %v1947_v3, %v669_v4  ;;  %vm925_vm10 = vcmp.lt.s32.totalorder %v797_v5, 1600  ;;  %v418_v4 = vld [vmem:[%s1931_s18 + $0x98] sm:$0xff] }
  0x91   : > { %v538_v21 = vsub.f32 %v282_v9, %v410_v10  ;;  %v1052_v22 = vsel %vm924_vm9, %v536_v7, 0.0  ;;  %v672_v25 = vadd.s32 120, %v1943_v1  ;;  %v800_v26 = vadd.s32 %v1947_v3, %v670_v11  ;;  %v291_v10 = vld [vmem:[%s1937_s20 + $0xa0] sm:$0xff] }
  0x92   : > { %v1177_v13 = vadd.f32 %v1176_v6, %v1049_v63  ;;  %vm926_vm11 = vcmp.lt.s32.totalorder %v798_v12, 1600  ;;  %v539_v28 = vsub.f32 %v283_v16, %v411_v17  ;;  %v1053_v29 = vsel %vm925_vm10, %v537_v14, 0.0  ;;  %v419_v11 = vld [vmem:[%s1931_s18 + $0xa0] sm:$0xff]  ;;  %v292_v17 = vld [vmem:[%s1937_s20 + $0xa8] sm:$0xff] }
  0x93   : > { %v673_v32 = vadd.s32 128, %v1943_v1  ;;  %v801_v33 = vadd.s32 %v1947_v3, %v671_v18  ;;  %vm927_vm12 = vcmp.lt.s32.totalorder %v799_v19, 1600  ;;  %v540_v35 = vsub.f32 %v284_v23, %v412_v24  ;;  %v420_v18 = vld [vmem:[%s1931_s18 + $0xa8] sm:$0xff]  ;;  %v293_v24 = vld [vmem:[%s1937_s20 + $0xb0] sm:$0xff] }
  0x94   : > { %v1178_v20 = vadd.f32 %v1177_v13, %v1050_v8  ;;  %v1054_v36 = vsel %vm926_vm11, %v538_v21, 0.0  ;;  %v674_v39 = vadd.s32 136, %v1943_v1  ;;  %v802_v40 = vadd.s32 %v1947_v3, %v672_v25  ;;  %v421_v25 = vld [vmem:[%s1931_s18 + $0xb0] sm:$0xff] }
  0x95   : > { %vm928_vm13 = vcmp.lt.s32.totalorder %v800_v26, 1600  ;;  %v541_v42 = vsub.f32 %v285_v30, %v413_v31  ;;  %v1055_v43 = vsel %vm927_vm12, %v539_v28, 0.0  ;;  %v675_v46 = vadd.s32 144, %v1943_v1  ;;  %v294_v31 = vld [vmem:[%s1937_s20 + $0xb8] sm:$0xff] }
  0x96   : > { %v1179_v27 = vadd.f32 %v1178_v20, %v1051_v15  ;;  %v803_v47 = vadd.s32 %v1947_v3, %v673_v32  ;;  %vm929_vm14 = vcmp.lt.s32.totalorder %v801_v33, 1600  ;;  %v542_v49 = vsub.f32 %v286_v37, %v414_v38  ;;  %v422_v32 = vld [vmem:[%s1931_s18 + $0xb8] sm:$0xff]  ;;  %v295_v38 = vld [vmem:[%s1937_s20 + $0xc0] sm:$0xff] }
  0x97   : > { %v1056_v50 = vsel %vm928_vm13, %v540_v35, 0.0  ;;  %v676_v53 = vadd.s32 152, %v1943_v1  ;;  %v804_v54 = vadd.s32 %v1947_v3, %v674_v39  ;;  %vm930_vm15 = vcmp.lt.s32.totalorder %v802_v40, 1600  ;;  %v423_v39 = vld [vmem:[%s1931_s18 + $0xc0] sm:$0xff] }
  0x98   : > { %v1180_v34 = vadd.f32 %v1179_v27, %v1052_v22  ;;  %v543_v56 = vsub.f32 %v287_v44, %v415_v45  ;;  %v1057_v57 = vsel %vm929_vm14, %v541_v42, 0.0  ;;  %v677_v60 = vadd.s32 160, %v1943_v1  ;;  %v296_v45 = vld [vmem:[%s1937_s20 + $0xc8] sm:$0xff] }
  0x99   : > { %v805_v61 = vadd.s32 %v1947_v3, %v675_v46  ;;  %vm931_vm0 = vcmp.lt.s32.totalorder %v803_v47, 1600  ;;  %v544_v63 = vsub.f32 %v288_v51, %v416_v52  ;;  %v1058_v0 = vsel %vm930_vm15, %v542_v49, 0.0  ;;  %v424_v46 = vld [vmem:[%s1931_s18 + $0xc8] sm:$0xff]  ;;  %v297_v52 = vld [vmem:[%s1937_s20 + $0xd0] sm:$0xff] }
  0x9a   : > { %v1181_v41 = vadd.f32 %v1180_v34, %v1053_v29  ;;  %v678_v5 = vadd.s32 168, %v1943_v1  ;;  %v806_v6 = vadd.s32 %v1947_v3, %v676_v53  ;;  %vm932_vm1 = vcmp.lt.s32.totalorder %v804_v54, 1600  ;;  %v425_v53 = vld [vmem:[%s1931_s18 + $0xd0] sm:$0xff] }
  0x9b   : > { %v545_v8 = vsub.f32 %v289_v58, %v417_v59  ;;  %v1059_v9 = vsel %vm931_vm0, %v543_v56, 0.0  ;;  %v679_v12 = vadd.s32 176, %v1943_v1  ;;  %v807_v13 = vadd.s32 %v1947_v3, %v677_v60  ;;  %v298_v59 = vld [vmem:[%s1937_s20 + $0xd8] sm:$0xff] }
  0x9c   : > { %v1182_v48 = vadd.f32 %v1181_v41, %v1054_v36  ;;  %vm933_vm2 = vcmp.lt.s32.totalorder %v805_v61, 1600  ;;  %v546_v15 = vsub.f32 %v290_v2, %v418_v4  ;;  %v1060_v16 = vsel %vm932_vm1, %v544_v63, 0.0  ;;  %v426_v60 = vld [vmem:[%s1931_s18 + $0xd8] sm:$0xff]  ;;  %v299_v4 = vld [vmem:[%s1937_s20 + $0xe0] sm:$0xff] }
  0x9d   : > { %v680_v19 = vadd.s32 184, %v1943_v1  ;;  %v808_v20 = vadd.s32 %v1947_v3, %v678_v5  ;;  %vm934_vm3 = vcmp.lt.s32.totalorder %v806_v6, 1600  ;;  %v547_v22 = vsub.f32 %v291_v10, %v419_v11  ;;  %v427_v5 = vld [vmem:[%s1931_s18 + $0xe0] sm:$0xff]  ;;  %v300_v11 = vld [vmem:[%s1937_s20 + $0xe8] sm:$0xff] }
  0x9e   : > { %v1183_v55 = vadd.f32 %v1182_v48, %v1055_v43  ;;  %v1061_v23 = vsel %vm933_vm2, %v545_v8, 0.0  ;;  %v681_v26 = vadd.s32 192, %v1943_v1  ;;  %v809_v27 = vadd.s32 %v1947_v3, %v679_v12  ;;  %v428_v12 = vld [vmem:[%s1931_s18 + $0xe8] sm:$0xff] }
  0x9f   : > { %vm935_vm4 = vcmp.lt.s32.totalorder %v807_v13, 1600  ;;  %v548_v29 = vsub.f32 %v292_v17, %v420_v18  ;;  %v1062_v30 = vsel %vm934_vm3, %v546_v15, 0.0  ;;  %v682_v33 = vadd.s32 200, %v1943_v1  ;;  %v301_v18 = vld [vmem:[%s1937_s20 + $0xf0] sm:$0xff] }
  0xa0   : > { %v1184_v62 = vadd.f32 %v1183_v55, %v1056_v50  ;;  %v810_v34 = vadd.s32 %v1947_v3, %v680_v19  ;;  %vm936_vm5 = vcmp.lt.s32.totalorder %v808_v20, 1600  ;;  %v549_v36 = vsub.f32 %v293_v24, %v421_v25  ;;  %v429_v19 = vld [vmem:[%s1931_s18 + $0xf0] sm:$0xff]  ;;  %v302_v25 = vld [vmem:[%s1937_s20 + $0xf8] sm:$0xff] }
  0xa1   : > { %v1063_v37 = vsel %vm935_vm4, %v547_v22, 0.0  ;;  %v683_v40 = vadd.s32 208, %v1943_v1  ;;  %v811_v41 = vadd.s32 %v1947_v3, %v681_v26  ;;  %vm937_vm6 = vcmp.lt.s32.totalorder %v809_v27, 1600  ;;  %v430_v26 = vld [vmem:[%s1931_s18 + $0xf8] sm:$0xff] }
  0xa2   : > { %v1185_v7 = vadd.f32 %v1184_v62, %v1057_v57  ;;  %v550_v43 = vsub.f32 %v294_v31, %v422_v32  ;;  %v1064_v44 = vsel %vm936_vm5, %v548_v29, 0.0  ;;  %v684_v47 = vadd.s32 216, %v1943_v1  ;;  %v303_v32 = vld [vmem:[%s1937_s20 + $0x100] sm:$0xff] }
  0xa3   : > { %v812_v48 = vadd.s32 %v1947_v3, %v682_v33  ;;  %vm938_vm7 = vcmp.lt.s32.totalorder %v810_v34, 1600  ;;  %v551_v50 = vsub.f32 %v295_v38, %v423_v39  ;;  %v1065_v51 = vsel %vm937_vm6, %v549_v36, 0.0  ;;  %v431_v33 = vld [vmem:[%s1931_s18 + $0x100] sm:$0xff]  ;;  %v304_v39 = vld [vmem:[%s1937_s20 + $0x108] sm:$0xff] }
  0xa4   : > { %v1186_v14 = vadd.f32 %v1185_v7, %v1058_v0  ;;  %v685_v54 = vadd.s32 224, %v1943_v1  ;;  %v813_v55 = vadd.s32 %v1947_v3, %v683_v40  ;;  %vm939_vm8 = vcmp.lt.s32.totalorder %v811_v41, 1600  ;;  %v432_v40 = vld [vmem:[%s1931_s18 + $0x108] sm:$0xff] }
  0xa5   : > { %v552_v57 = vsub.f32 %v296_v45, %v424_v46  ;;  %v1066_v58 = vsel %vm938_vm7, %v550_v43, 0.0  ;;  %v686_v61 = vadd.s32 232, %v1943_v1  ;;  %v814_v62 = vadd.s32 %v1947_v3, %v684_v47  ;;  %v305_v46 = vld [vmem:[%s1937_s20 + $0x110] sm:$0xff] }
  0xa6   : > { %v1187_v21 = vadd.f32 %v1186_v14, %v1059_v9  ;;  %vm940_vm9 = vcmp.lt.s32.totalorder %v812_v48, 1600  ;;  %v553_v0 = vsub.f32 %v297_v52, %v425_v53  ;;  %v1067_v2 = vsel %vm939_vm8, %v551_v50, 0.0  ;;  %v433_v47 = vld [vmem:[%s1931_s18 + $0x110] sm:$0xff]  ;;  %v306_v53 = vld [vmem:[%s1937_s20 + $0x118] sm:$0xff] }
  0xa7   : > { %v687_v6 = vadd.s32 240, %v1943_v1  ;;  %v815_v7 = vadd.s32 %v1947_v3, %v685_v54  ;;  %vm941_vm10 = vcmp.lt.s32.totalorder %v813_v55, 1600  ;;  %v554_v9 = vsub.f32 %v298_v59, %v426_v60  ;;  %v434_v54 = vld [vmem:[%s1931_s18 + $0x118] sm:$0xff]  ;;  %v307_v60 = vld [vmem:[%s1937_s20 + $0x120] sm:$0xff] }
  0xa8   : > { %v1188_v28 = vadd.f32 %v1187_v21, %v1060_v16  ;;  %v1068_v10 = vsel %vm940_vm9, %v552_v57, 0.0  ;;  %v688_v13 = vadd.s32 248, %v1943_v1  ;;  %v816_v14 = vadd.s32 %v1947_v3, %v686_v61  ;;  %v435_v61 = vld [vmem:[%s1931_s18 + $0x120] sm:$0xff] }
  0xa9   : > { %vm942_vm11 = vcmp.lt.s32.totalorder %v814_v62, 1600  ;;  %v555_v16 = vsub.f32 %v299_v4, %v427_v5  ;;  %v1069_v17 = vsel %vm941_vm10, %v553_v0, 0.0  ;;  %v689_v20 = vadd.s32 256, %v1943_v1  ;;  %v308_v5 = vld [vmem:[%s1937_s20 + $0x128] sm:$0xff] }
  0xaa   : > { %v1189_v35 = vadd.f32 %v1188_v28, %v1061_v23  ;;  %v817_v21 = vadd.s32 %v1947_v3, %v687_v6  ;;  %vm943_vm12 = vcmp.lt.s32.totalorder %v815_v7, 1600  ;;  %v556_v23 = vsub.f32 %v300_v11, %v428_v12  ;;  %v436_v6 = vld [vmem:[%s1931_s18 + $0x128] sm:$0xff]  ;;  %v309_v12 = vld [vmem:[%s1937_s20 + $0x130] sm:$0xff] }
  0xab   : > { %v1070_v24 = vsel %vm942_vm11, %v554_v9, 0.0  ;;  %v690_v27 = vadd.s32 264, %v1943_v1  ;;  %v818_v28 = vadd.s32 %v1947_v3, %v688_v13  ;;  %vm944_vm13 = vcmp.lt.s32.totalorder %v816_v14, 1600  ;;  %v437_v13 = vld [vmem:[%s1931_s18 + $0x130] sm:$0xff] }
  0xac   : > { %v1190_v42 = vadd.f32 %v1189_v35, %v1062_v30  ;;  %v557_v30 = vsub.f32 %v301_v18, %v429_v19  ;;  %v1071_v31 = vsel %vm943_vm12, %v555_v16, 0.0  ;;  %v691_v34 = vadd.s32 272, %v1943_v1  ;;  %v310_v19 = vld [vmem:[%s1937_s20 + $0x138] sm:$0xff] }
  0xad   : > { %v819_v35 = vadd.s32 %v1947_v3, %v689_v20  ;;  %vm945_vm14 = vcmp.lt.s32.totalorder %v817_v21, 1600  ;;  %v1072_v38 = vsel %vm944_vm13, %v556_v23, 0.0  ;;  %v692_v41 = vadd.s32 280, %v1943_v1  ;;  %v438_v20 = vld [vmem:[%s1931_s18 + $0x138] sm:$0xff] }
  0xae   : > { %v1191_v49 = vadd.f32 %v1190_v42, %v1063_v37  ;;  %v558_v37 = vsub.f32 %v302_v25, %v430_v26  ;;  %v820_v42 = vadd.s32 %v1947_v3, %v690_v27  ;;  %vm946_vm15 = vcmp.lt.s32.totalorder %v818_v28, 1600  ;;  %v311_v26 = vld [vmem:[%s1937_s20 + $0x140] sm:$0xff] }
  0xaf   : > { %v1073_v45 = vsel %vm945_vm14, %v557_v30, 0.0  ;;  %v693_v48 = vadd.s32 288, %v1943_v1  ;;  %vm947_vm0 = vcmp.lt.s32.totalorder %v819_v35, 1600  ;;  %v694_v55 = vadd.s32 296, %v1943_v1  ;;  %v439_v27 = vld [vmem:[%s1931_s18 + $0x140] sm:$0xff] }
  0xb0   : > { %v1192_v56 = vadd.f32 %v1191_v49, %v1064_v44  ;;  %v559_v44 = vsub.f32 %v303_v32, %v431_v33  ;;  %v821_v49 = vadd.s32 %v1947_v3, %v691_v34  ;;  %v1074_v52 = vsel %vm946_vm15, %v558_v37, 0.0  ;;  %v312_v33 = vld [vmem:[%s1937_s20 + $0x148] sm:$0xff] }
  0xb1   : > { %vm948_vm1 = vcmp.lt.s32.totalorder %v820_v42, 1600  ;;  %v695_v62 = vadd.s32 304, %v1943_v1  ;;  %v696_v7 = vadd.s32 312, %v1943_v1  ;;  %v697_v14 = vadd.s32 320, %v1943_v1  ;;  %v440_v34 = vld [vmem:[%s1931_s18 + $0x148] sm:$0xff] }
  0xb2   : > { %v1193_v63 = vadd.f32 %v1192_v56, %v1065_v51  ;;  %v560_v51 = vsub.f32 %v304_v39, %v432_v40  ;;  %v822_v56 = vadd.s32 %v1947_v3, %v692_v41  ;;  %v1075_v59 = vsel %vm947_vm0, %v559_v44, 0.0  ;;  %v313_v40 = vld [vmem:[%s1937_s20 + $0x150] sm:$0xff] }
  0xb3   : > { %vm949_vm2 = vcmp.lt.s32.totalorder %v821_v49, 1600  ;;  %v698_v21 = vadd.s32 328, %v1943_v1  ;;  %v699_v28 = vadd.s32 336, %v1943_v1  ;;  %v700_v35 = vadd.s32 344, %v1943_v1  ;;  %v441_v41 = vld [vmem:[%s1931_s18 + $0x150] sm:$0xff] }
  0xb4   : > { %v1194_v8 = vadd.f32 %v1193_v63, %v1066_v58  ;;  %v561_v58 = vsub.f32 %v305_v46, %v433_v47  ;;  %v823_v63 = vadd.s32 %v1947_v3, %v693_v48  ;;  %v1076_v4 = vsel %vm948_vm1, %v560_v51, 0.0  ;;  %v314_v47 = vld [vmem:[%s1937_s20 + $0x158] sm:$0xff] }
  0xb5   : > { %vm950_vm3 = vcmp.lt.s32.totalorder %v822_v56, 1600  ;;  %v701_v42 = vadd.s32 352, %v1943_v1  ;;  %v442_v48 = vld [vmem:[%s1931_s18 + $0x158] sm:$0xff]  ;;  %v702_v49 = vadd.s32 360, %v1943_v1  ;;  %v703_v56 = vadd.s32 368, %v1943_v1 }
  0xb6   : > { %v1195_v15 = vadd.f32 %v1194_v8, %v1067_v2  ;;  %v562_v2 = vsub.f32 %v306_v53, %v434_v54  ;;  %v824_v8 = vadd.s32 %v1947_v3, %v694_v55  ;;  %v1077_v11 = vsel %vm949_vm2, %v561_v58, 0.0  ;;  %v315_v54 = vld [vmem:[%s1937_s20 + $0x160] sm:$0xff] }
  0xb7   : > { %vm951_vm4 = vcmp.lt.s32.totalorder %v823_v63, 1600  ;;  %v443_v55 = vld [vmem:[%s1931_s18 + $0x160] sm:$0xff]  ;;  %v704_v63 = vadd.s32 376, %v1943_v1 }
  0xb8   : > { %v1196_v22 = vadd.f32 %v1195_v15, %v1068_v10  ;;  %v563_v10 = vsub.f32 %v307_v60, %v435_v61  ;;  %v825_v15 = vadd.s32 %v1947_v3, %v695_v62  ;;  %v1078_v18 = vsel %vm950_vm3, %v562_v2, 0.0  ;;  %v316_v61 = vld [vmem:[%s1937_s20 + $0x168] sm:$0xff] }
  0xb9   : > { %vm952_vm5 = vcmp.lt.s32.totalorder %v824_v8, 1600  ;;  %v444_v62 = vld [vmem:[%s1931_s18 + $0x168] sm:$0xff]  ;;  %v705_v8 = vadd.s32 384, %v1943_v1 }
  0xba   : > { %v1197_v29 = vadd.f32 %v1196_v22, %v1069_v17  ;;  %v564_v17 = vsub.f32 %v308_v5, %v436_v6  ;;  %v826_v22 = vadd.s32 %v1947_v3, %v696_v7  ;;  %v1079_v25 = vsel %vm951_vm4, %v563_v10, 0.0  ;;  %v317_v6 = vld [vmem:[%s1937_s20 + $0x170] sm:$0xff] }
  0xbb   : > { %vm953_vm6 = vcmp.lt.s32.totalorder %v825_v15, 1600  ;;  %v445_v7 = vld [vmem:[%s1931_s18 + $0x170] sm:$0xff]  ;;  %v706_v15 = vadd.s32 392, %v1943_v1 }
  0xbc   : > { %v1198_v36 = vadd.f32 %v1197_v29, %v1070_v24  ;;  %v565_v24 = vsub.f32 %v309_v12, %v437_v13  ;;  %v827_v29 = vadd.s32 %v1947_v3, %v697_v14  ;;  %v1080_v32 = vsel %vm952_vm5, %v564_v17, 0.0  ;;  %v318_v13 = vld [vmem:[%s1937_s20 + $0x178] sm:$0xff] }
  0xbd   : > { %vm954_vm7 = vcmp.lt.s32.totalorder %v826_v22, 1600  ;;  %v446_v14 = vld [vmem:[%s1931_s18 + $0x178] sm:$0xff]  ;;  %v707_v22 = vadd.s32 400, %v1943_v1 }
  0xbe   : > { %v1199_v43 = vadd.f32 %v1198_v36, %v1071_v31  ;;  %v566_v31 = vsub.f32 %v310_v19, %v438_v20  ;;  %v828_v36 = vadd.s32 %v1947_v3, %v698_v21  ;;  %v1081_v39 = vsel %vm953_vm6, %v565_v24, 0.0  ;;  %v319_v20 = vld [vmem:[%s1937_s20 + $0x180] sm:$0xff] }
  0xbf   : > { %vm955_vm8 = vcmp.lt.s32.totalorder %v827_v29, 1600  ;;  %v447_v21 = vld [vmem:[%s1931_s18 + $0x180] sm:$0xff]  ;;  %v708_v29 = vadd.s32 408, %v1943_v1 }
  0xc0   : > { %v1200_v50 = vadd.f32 %v1199_v43, %v1072_v38  ;;  %v567_v38 = vsub.f32 %v311_v26, %v439_v27  ;;  %v829_v43 = vadd.s32 %v1947_v3, %v699_v28  ;;  %v1082_v46 = vsel %vm954_vm7, %v566_v31, 0.0  ;;  %v320_v27 = vld [vmem:[%s1937_s20 + $0x188] sm:$0xff] }
  0xc1   : > { %vm956_vm9 = vcmp.lt.s32.totalorder %v828_v36, 1600  ;;  %v448_v28 = vld [vmem:[%s1931_s18 + $0x188] sm:$0xff]  ;;  %v709_v36 = vadd.s32 416, %v1943_v1 }
  0xc2   : > { %v1201_v57 = vadd.f32 %v1200_v50, %v1073_v45  ;;  %v568_v45 = vsub.f32 %v312_v33, %v440_v34  ;;  %v830_v50 = vadd.s32 %v1947_v3, %v700_v35  ;;  %v1083_v53 = vsel %vm955_vm8, %v567_v38, 0.0  ;;  %v321_v34 = vld [vmem:[%s1937_s20 + $0x190] sm:$0xff] }
  0xc3   : > { %vm957_vm10 = vcmp.lt.s32.totalorder %v829_v43, 1600  ;;  %v449_v35 = vld [vmem:[%s1931_s18 + $0x190] sm:$0xff]  ;;  %v710_v43 = vadd.s32 424, %v1943_v1 }
  0xc4   : > { %v1202_v0 = vadd.f32 %v1201_v57, %v1074_v52  ;;  %v569_v52 = vsub.f32 %v313_v40, %v441_v41  ;;  %v831_v57 = vadd.s32 %v1947_v3, %v701_v42  ;;  %v1084_v60 = vsel %vm956_vm9, %v568_v45, 0.0  ;;  %v322_v41 = vld [vmem:[%s1937_s20 + $0x198] sm:$0xff] }
  0xc5   : > { %vm958_vm11 = vcmp.lt.s32.totalorder %v830_v50, 1600  ;;  %v450_v42 = vld [vmem:[%s1931_s18 + $0x198] sm:$0xff]  ;;  %v711_v50 = vadd.s32 432, %v1943_v1 }
  0xc6   : > { %v1203_v9 = vadd.f32 %v1202_v0, %v1075_v59  ;;  %v570_v59 = vsub.f32 %v314_v47, %v442_v48  ;;  %v832_v0 = vadd.s32 %v1947_v3, %v702_v49  ;;  %v1085_v5 = vsel %vm957_vm10, %v569_v52, 0.0  ;;  %v323_v48 = vld [vmem:[%s1937_s20 + $0x1a0] sm:$0xff] }
  0xc7   : > { %vm959_vm12 = vcmp.lt.s32.totalorder %v831_v57, 1600  ;;  %v451_v49 = vld [vmem:[%s1931_s18 + $0x1a0] sm:$0xff]  ;;  %v712_v57 = vadd.s32 440, %v1943_v1 }
  0xc8   : > { %v1204_v16 = vadd.f32 %v1203_v9, %v1076_v4  ;;  %v571_v4 = vsub.f32 %v315_v54, %v443_v55  ;;  %v833_v9 = vadd.s32 %v1947_v3, %v703_v56  ;;  %v1086_v12 = vsel %vm958_vm11, %v570_v59, 0.0  ;;  %v324_v55 = vld [vmem:[%s1937_s20 + $0x1a8] sm:$0xff] }
  0xc9   : > { %vm960_vm13 = vcmp.lt.s32.totalorder %v832_v0, 1600  ;;  %v452_v56 = vld [vmem:[%s1931_s18 + $0x1a8] sm:$0xff]  ;;  %v713_v0 = vadd.s32 448, %v1943_v1 }
  0xca   : > { %v1205_v23 = vadd.f32 %v1204_v16, %v1077_v11  ;;  %v572_v11 = vsub.f32 %v316_v61, %v444_v62  ;;  %v834_v16 = vadd.s32 %v1947_v3, %v704_v63  ;;  %v1087_v19 = vsel %vm959_vm12, %v571_v4, 0.0  ;;  %v325_v62 = vld [vmem:[%s1937_s20 + $0x1b0] sm:$0xff] }
  0xcb   : > { %vm961_vm14 = vcmp.lt.s32.totalorder %v833_v9, 1600  ;;  %v453_v63 = vld [vmem:[%s1931_s18 + $0x1b0] sm:$0xff]  ;;  %v714_v9 = vadd.s32 456, %v1943_v1 }
  0xcc   : > { %v1206_v30 = vadd.f32 %v1205_v23, %v1078_v18  ;;  %v573_v18 = vsub.f32 %v317_v6, %v445_v7  ;;  %v835_v23 = vadd.s32 %v1947_v3, %v705_v8  ;;  %v1088_v26 = vsel %vm960_vm13, %v572_v11, 0.0  ;;  %v326_v7 = vld [vmem:[%s1937_s20 + $0x1b8] sm:$0xff] }
  0xcd   : > { %vm962_vm15 = vcmp.lt.s32.totalorder %v834_v16, 1600  ;;  %v454_v8 = vld [vmem:[%s1931_s18 + $0x1b8] sm:$0xff]  ;;  %v715_v16 = vadd.s32 464, %v1943_v1 }
  0xce   : > { %v1207_v37 = vadd.f32 %v1206_v30, %v1079_v25  ;;  %v574_v25 = vsub.f32 %v318_v13, %v446_v14  ;;  %v836_v30 = vadd.s32 %v1947_v3, %v706_v15  ;;  %v1089_v33 = vsel %vm961_vm14, %v573_v18, 0.0  ;;  %v327_v14 = vld [vmem:[%s1937_s20 + $0x1c0] sm:$0xff] }
  0xcf   : > { %vm963_vm0 = vcmp.lt.s32.totalorder %v835_v23, 1600  ;;  %v455_v15 = vld [vmem:[%s1931_s18 + $0x1c0] sm:$0xff]  ;;  %v716_v23 = vadd.s32 472, %v1943_v1 }
  0xd0   : > { %v1208_v44 = vadd.f32 %v1207_v37, %v1080_v32  ;;  %v575_v32 = vsub.f32 %v319_v20, %v447_v21  ;;  %v837_v37 = vadd.s32 %v1947_v3, %v707_v22  ;;  %v1090_v40 = vsel %vm962_vm15, %v574_v25, 0.0  ;;  %v328_v21 = vld [vmem:[%s1937_s20 + $0x1c8] sm:$0xff] }
  0xd1   : > { %vm964_vm1 = vcmp.lt.s32.totalorder %v836_v30, 1600  ;;  %v456_v22 = vld [vmem:[%s1931_s18 + $0x1c8] sm:$0xff]  ;;  %v717_v30 = vadd.s32 480, %v1943_v1 }
  0xd2   : > { %v1209_v51 = vadd.f32 %v1208_v44, %v1081_v39  ;;  %v576_v39 = vsub.f32 %v320_v27, %v448_v28  ;;  %v838_v44 = vadd.s32 %v1947_v3, %v708_v29  ;;  %v1091_v47 = vsel %vm963_vm0, %v575_v32, 0.0  ;;  %v329_v28 = vld [vmem:[%s1937_s20 + $0x1d0] sm:$0xff] }
  0xd3   : > { %vm965_vm2 = vcmp.lt.s32.totalorder %v837_v37, 1600  ;;  %v457_v29 = vld [vmem:[%s1931_s18 + $0x1d0] sm:$0xff]  ;;  %v718_v37 = vadd.s32 488, %v1943_v1 }
  0xd4   : > { %v1210_v58 = vadd.f32 %v1209_v51, %v1082_v46  ;;  %v577_v46 = vsub.f32 %v321_v34, %v449_v35  ;;  %v839_v51 = vadd.s32 %v1947_v3, %v709_v36  ;;  %v1092_v54 = vsel %vm964_vm1, %v576_v39, 0.0  ;;  %v330_v35 = vld [vmem:[%s1937_s20 + $0x1d8] sm:$0xff] }
  0xd5   : > { %vm966_vm3 = vcmp.lt.s32.totalorder %v838_v44, 1600  ;;  %v458_v36 = vld [vmem:[%s1931_s18 + $0x1d8] sm:$0xff]  ;;  %v719_v44 = vadd.s32 496, %v1943_v1 }
  0xd6   : > { %v1211_v2 = vadd.f32 %v1210_v58, %v1083_v53  ;;  %v578_v53 = vsub.f32 %v322_v41, %v450_v42  ;;  %v840_v58 = vadd.s32 %v1947_v3, %v710_v43  ;;  %v1093_v61 = vsel %vm965_vm2, %v577_v46, 0.0  ;;  %v331_v42 = vld [vmem:[%s1937_s20 + $0x1e0] sm:$0xff] }
  0xd7   : > { %vm967_vm4 = vcmp.lt.s32.totalorder %v839_v51, 1600  ;;  %v459_v43 = vld [vmem:[%s1931_s18 + $0x1e0] sm:$0xff]  ;;  %v720_v51 = vadd.s32 504, %v1943_v1 }
  0xd8   : > { %v1212_v10 = vadd.f32 %v1211_v2, %v1084_v60  ;;  %v579_v60 = vsub.f32 %v323_v48, %v451_v49  ;;  %v841_v2 = vadd.s32 %v1947_v3, %v711_v50  ;;  %v1094_v6 = vsel %vm966_vm3, %v578_v53, 0.0  ;;  %v332_v49 = vld [vmem:[%s1937_s20 + $0x1e8] sm:$0xff] }
  0xd9   : > { %vm968_vm5 = vcmp.lt.s32.totalorder %v840_v58, 1600  ;;  %v460_v50 = vld [vmem:[%s1931_s18 + $0x1e8] sm:$0xff]  ;;  %v721_v58 = vadd.s32 512, %v1943_v1 }
  0xda   : > { %v1213_v17 = vadd.f32 %v1212_v10, %v1085_v5  ;;  %v580_v5 = vsub.f32 %v324_v55, %v452_v56  ;;  %v842_v10 = vadd.s32 %v1947_v3, %v712_v57  ;;  %v1095_v13 = vsel %vm967_vm4, %v579_v60, 0.0  ;;  %v333_v56 = vld [vmem:[%s1937_s20 + $0x1f0] sm:$0xff] }
  0xdb   : > { %vm969_vm6 = vcmp.lt.s32.totalorder %v841_v2, 1600  ;;  %v461_v57 = vld [vmem:[%s1931_s18 + $0x1f0] sm:$0xff]  ;;  %v722_v2 = vadd.s32 520, %v1943_v1 }
  0xdc   : > { %v1214_v24 = vadd.f32 %v1213_v17, %v1086_v12  ;;  %v581_v12 = vsub.f32 %v325_v62, %v453_v63  ;;  %v843_v17 = vadd.s32 %v1947_v3, %v713_v0  ;;  %v1096_v20 = vsel %vm968_vm5, %v580_v5, 0.0  ;;  %v334_v63 = vld [vmem:[%s1937_s20 + $0x1f8] sm:$0xff] }
  0xdd   : > { %vm970_vm7 = vcmp.lt.s32.totalorder %v842_v10, 1600  ;;  %v462_v0 = vld [vmem:[%s1931_s18 + $0x1f8] sm:$0xff]  ;;  %v723_v10 = vadd.s32 528, %v1943_v1 }
  0xde   : > { %v1215_v31 = vadd.f32 %v1214_v24, %v1087_v19  ;;  %v582_v19 = vsub.f32 %v326_v7, %v454_v8  ;;  %v844_v24 = vadd.s32 %v1947_v3, %v714_v9  ;;  %v1097_v27 = vsel %vm969_vm6, %v581_v12, 0.0  ;;  %v335_v8 = vld [vmem:[%s1937_s20 + $0x200] sm:$0xff] }
  0xdf   : > { %vm971_vm8 = vcmp.lt.s32.totalorder %v843_v17, 1600  ;;  %v463_v9 = vld [vmem:[%s1931_s18 + $0x200] sm:$0xff]  ;;  %v724_v17 = vadd.s32 536, %v1943_v1 }
  0xe0   : > { %v1216_v38 = vadd.f32 %v1215_v31, %v1088_v26  ;;  %v583_v26 = vsub.f32 %v327_v14, %v455_v15  ;;  %v845_v31 = vadd.s32 %v1947_v3, %v715_v16  ;;  %v1098_v34 = vsel %vm970_vm7, %v582_v19, 0.0  ;;  %v336_v15 = vld [vmem:[%s1937_s20 + $0x208] sm:$0xff] }
  0xe1   : > { %vm972_vm9 = vcmp.lt.s32.totalorder %v844_v24, 1600  ;;  %v464_v16 = vld [vmem:[%s1931_s18 + $0x208] sm:$0xff]  ;;  %v725_v24 = vadd.s32 544, %v1943_v1 }
  0xe2   : > { %v1217_v45 = vadd.f32 %v1216_v38, %v1089_v33  ;;  %v584_v33 = vsub.f32 %v328_v21, %v456_v22  ;;  %v846_v38 = vadd.s32 %v1947_v3, %v716_v23  ;;  %v1099_v41 = vsel %vm971_vm8, %v583_v26, 0.0  ;;  %v337_v22 = vld [vmem:[%s1937_s20 + $0x210] sm:$0xff] }
  0xe3   : > { %vm973_vm10 = vcmp.lt.s32.totalorder %v845_v31, 1600  ;;  %v465_v23 = vld [vmem:[%s1931_s18 + $0x210] sm:$0xff]  ;;  %v726_v31 = vadd.s32 552, %v1943_v1 }
  0xe4   : > { %v1218_v52 = vadd.f32 %v1217_v45, %v1090_v40  ;;  %v585_v40 = vsub.f32 %v329_v28, %v457_v29  ;;  %v847_v45 = vadd.s32 %v1947_v3, %v717_v30  ;;  %v1100_v48 = vsel %vm972_vm9, %v584_v33, 0.0  ;;  %v338_v29 = vld [vmem:[%s1937_s20 + $0x218] sm:$0xff] }
  0xe5   : > { %vm974_vm11 = vcmp.lt.s32.totalorder %v846_v38, 1600  ;;  %v466_v30 = vld [vmem:[%s1931_s18 + $0x218] sm:$0xff]  ;;  %v727_v38 = vadd.s32 560, %v1943_v1 }
  0xe6   : > { %v1219_v59 = vadd.f32 %v1218_v52, %v1091_v47  ;;  %v586_v47 = vsub.f32 %v330_v35, %v458_v36  ;;  %v848_v52 = vadd.s32 %v1947_v3, %v718_v37  ;;  %v1101_v55 = vsel %vm973_vm10, %v585_v40, 0.0  ;;  %v339_v36 = vld [vmem:[%s1937_s20 + $0x220] sm:$0xff] }
  0xe7   : > { %vm975_vm12 = vcmp.lt.s32.totalorder %v847_v45, 1600  ;;  %v467_v37 = vld [vmem:[%s1931_s18 + $0x220] sm:$0xff]  ;;  %v728_v45 = vadd.s32 568, %v1943_v1 }
  0xe8   : > { %v1220_v4 = vadd.f32 %v1219_v59, %v1092_v54  ;;  %v587_v54 = vsub.f32 %v331_v42, %v459_v43  ;;  %v849_v59 = vadd.s32 %v1947_v3, %v719_v44  ;;  %v1102_v62 = vsel %vm974_vm11, %v586_v47, 0.0  ;;  %v340_v43 = vld [vmem:[%s1937_s20 + $0x228] sm:$0xff] }
  0xe9   : > { %vm976_vm13 = vcmp.lt.s32.totalorder %v848_v52, 1600  ;;  %v468_v44 = vld [vmem:[%s1931_s18 + $0x228] sm:$0xff]  ;;  %v729_v52 = vadd.s32 576, %v1943_v1 }
  0xea   : > { %v1221_v11 = vadd.f32 %v1220_v4, %v1093_v61  ;;  %v588_v61 = vsub.f32 %v332_v49, %v460_v50  ;;  %v850_v4 = vadd.s32 %v1947_v3, %v720_v51  ;;  %v1103_v7 = vsel %vm975_vm12, %v587_v54, 0.0  ;;  %v341_v50 = vld [vmem:[%s1937_s20 + $0x230] sm:$0xff] }
  0xeb   : > { %vm977_vm14 = vcmp.lt.s32.totalorder %v849_v59, 1600  ;;  %v469_v51 = vld [vmem:[%s1931_s18 + $0x230] sm:$0xff]  ;;  %v730_v59 = vadd.s32 584, %v1943_v1 }
  0xec   : > { %v1222_v18 = vadd.f32 %v1221_v11, %v1094_v6  ;;  %v589_v6 = vsub.f32 %v333_v56, %v461_v57  ;;  %v851_v11 = vadd.s32 %v1947_v3, %v721_v58  ;;  %v1104_v14 = vsel %vm976_vm13, %v588_v61, 0.0  ;;  %v342_v57 = vld [vmem:[%s1937_s20 + $0x238] sm:$0xff] }
  0xed   : > { %vm978_vm15 = vcmp.lt.s32.totalorder %v850_v4, 1600  ;;  %v470_v58 = vld [vmem:[%s1931_s18 + $0x238] sm:$0xff]  ;;  %v731_v4 = vadd.s32 592, %v1943_v1 }
  0xee   : > { %v1223_v25 = vadd.f32 %v1222_v18, %v1095_v13  ;;  %v590_v13 = vsub.f32 %v334_v63, %v462_v0  ;;  %v852_v18 = vadd.s32 %v1947_v3, %v722_v2  ;;  %v1105_v21 = vsel %vm977_vm14, %v589_v6, 0.0  ;;  %v343_v0 = vld [vmem:[%s1937_s20 + $0x240] sm:$0xff] }
  0xef   : > { %vm979_vm0 = vcmp.lt.s32.totalorder %v851_v11, 1600  ;;  %v471_v2 = vld [vmem:[%s1931_s18 + $0x240] sm:$0xff]  ;;  %v732_v11 = vadd.s32 600, %v1943_v1 }
  0xf0   : > { %v1224_v32 = vadd.f32 %v1223_v25, %v1096_v20  ;;  %v591_v20 = vsub.f32 %v335_v8, %v463_v9  ;;  %v853_v25 = vadd.s32 %v1947_v3, %v723_v10  ;;  %v1106_v28 = vsel %vm978_vm15, %v590_v13, 0.0  ;;  %v344_v9 = vld [vmem:[%s1937_s20 + $0x248] sm:$0xff] }
  0xf1   : > { %vm980_vm1 = vcmp.lt.s32.totalorder %v852_v18, 1600  ;;  %v472_v10 = vld [vmem:[%s1931_s18 + $0x248] sm:$0xff]  ;;  %v733_v18 = vadd.s32 608, %v1943_v1 }
  0xf2   : > { %v1225_v39 = vadd.f32 %v1224_v32, %v1097_v27  ;;  %v592_v27 = vsub.f32 %v336_v15, %v464_v16  ;;  %v854_v32 = vadd.s32 %v1947_v3, %v724_v17  ;;  %v1107_v35 = vsel %vm979_vm0, %v591_v20, 0.0  ;;  %v345_v16 = vld [vmem:[%s1937_s20 + $0x250] sm:$0xff] }
  0xf3   : > { %vm981_vm2 = vcmp.lt.s32.totalorder %v853_v25, 1600  ;;  %v473_v17 = vld [vmem:[%s1931_s18 + $0x250] sm:$0xff]  ;;  %v734_v25 = vadd.s32 616, %v1943_v1 }
  0xf4   : > { %v1226_v46 = vadd.f32 %v1225_v39, %v1098_v34  ;;  %v593_v34 = vsub.f32 %v337_v22, %v465_v23  ;;  %v855_v39 = vadd.s32 %v1947_v3, %v725_v24  ;;  %v1108_v42 = vsel %vm980_vm1, %v592_v27, 0.0  ;;  %v346_v23 = vld [vmem:[%s1937_s20 + $0x258] sm:$0xff] }
  0xf5   : > { %vm982_vm3 = vcmp.lt.s32.totalorder %v854_v32, 1600  ;;  %v474_v24 = vld [vmem:[%s1931_s18 + $0x258] sm:$0xff]  ;;  %v735_v32 = vadd.s32 624, %v1943_v1 }
  0xf6   : > { %v1227_v53 = vadd.f32 %v1226_v46, %v1099_v41  ;;  %v594_v41 = vsub.f32 %v338_v29, %v466_v30  ;;  %v856_v46 = vadd.s32 %v1947_v3, %v726_v31  ;;  %v1109_v49 = vsel %vm981_vm2, %v593_v34, 0.0  ;;  %v347_v30 = vld [vmem:[%s1937_s20 + $0x260] sm:$0xff] }
  0xf7   : > { %vm983_vm4 = vcmp.lt.s32.totalorder %v855_v39, 1600  ;;  %v475_v31 = vld [vmem:[%s1931_s18 + $0x260] sm:$0xff]  ;;  %v736_v39 = vadd.s32 632, %v1943_v1 }
  0xf8   : > { %v1228_v60 = vadd.f32 %v1227_v53, %v1100_v48  ;;  %v595_v48 = vsub.f32 %v339_v36, %v467_v37  ;;  %v857_v53 = vadd.s32 %v1947_v3, %v727_v38  ;;  %v1110_v56 = vsel %vm982_vm3, %v594_v41, 0.0  ;;  %v348_v37 = vld [vmem:[%s1937_s20 + $0x268] sm:$0xff] }
  0xf9   : > { %vm984_vm5 = vcmp.lt.s32.totalorder %v856_v46, 1600  ;;  %v476_v38 = vld [vmem:[%s1931_s18 + $0x268] sm:$0xff]  ;;  %v737_v46 = vadd.s32 640, %v1943_v1 }
  0xfa   : > { %v1229_v5 = vadd.f32 %v1228_v60, %v1101_v55  ;;  %v596_v55 = vsub.f32 %v340_v43, %v468_v44  ;;  %v858_v60 = vadd.s32 %v1947_v3, %v728_v45  ;;  %v1111_v63 = vsel %vm983_vm4, %v595_v48, 0.0  ;;  %v349_v44 = vld [vmem:[%s1937_s20 + $0x270] sm:$0xff] }
  0xfb   : > { %vm985_vm6 = vcmp.lt.s32.totalorder %v857_v53, 1600  ;;  %v477_v45 = vld [vmem:[%s1931_s18 + $0x270] sm:$0xff]  ;;  %v738_v53 = vadd.s32 648, %v1943_v1 }
  0xfc   : > { %v1230_v12 = vadd.f32 %v1229_v5, %v1102_v62  ;;  %v597_v62 = vsub.f32 %v341_v50, %v469_v51  ;;  %v859_v5 = vadd.s32 %v1947_v3, %v729_v52  ;;  %v1112_v8 = vsel %vm984_vm5, %v596_v55, 0.0  ;;  %v350_v51 = vld [vmem:[%s1937_s20 + $0x278] sm:$0xff] }
  0xfd   : > { %vm986_vm7 = vcmp.lt.s32.totalorder %v858_v60, 1600  ;;  %v478_v52 = vld [vmem:[%s1931_s18 + $0x278] sm:$0xff]  ;;  %v739_v60 = vadd.s32 656, %v1943_v1 }
  0xfe   : > { %v1231_v19 = vadd.f32 %v1230_v12, %v1103_v7  ;;  %v598_v7 = vsub.f32 %v342_v57, %v470_v58  ;;  %v860_v12 = vadd.s32 %v1947_v3, %v730_v59  ;;  %v1113_v15 = vsel %vm985_vm6, %v597_v62, 0.0  ;;  %v351_v58 = vld [vmem:[%s1937_s20 + $0x280] sm:$0xff] }
  0xff   : > { %vm987_vm8 = vcmp.lt.s32.totalorder %v859_v5, 1600  ;;  %v479_v59 = vld [vmem:[%s1931_s18 + $0x280] sm:$0xff]  ;;  %v740_v5 = vadd.s32 664, %v1943_v1 }
 0x100   : > { %v1232_v26 = vadd.f32 %v1231_v19, %v1104_v14  ;;  %v599_v14 = vsub.f32 %v343_v0, %v471_v2  ;;  %v861_v19 = vadd.s32 %v1947_v3, %v731_v4  ;;  %v1114_v22 = vsel %vm986_vm7, %v598_v7, 0.0  ;;  %v352_v2 = vld [vmem:[%s1937_s20 + $0x288] sm:$0xff] }
 0x101   : > { %vm988_vm9 = vcmp.lt.s32.totalorder %v860_v12, 1600  ;;  %v480_v4 = vld [vmem:[%s1931_s18 + $0x288] sm:$0xff]  ;;  %v741_v12 = vadd.s32 672, %v1943_v1 }
 0x102   : > { %v1233_v33 = vadd.f32 %v1232_v26, %v1105_v21  ;;  %v600_v21 = vsub.f32 %v344_v9, %v472_v10  ;;  %v862_v26 = vadd.s32 %v1947_v3, %v732_v11  ;;  %v1115_v29 = vsel %vm987_vm8, %v599_v14, 0.0  ;;  %v353_v10 = vld [vmem:[%s1937_s20 + $0x290] sm:$0xff] }
 0x103   : > { %vm989_vm10 = vcmp.lt.s32.totalorder %v861_v19, 1600  ;;  %v481_v11 = vld [vmem:[%s1931_s18 + $0x290] sm:$0xff]  ;;  %v742_v19 = vadd.s32 680, %v1943_v1 }
 0x104   : > { %v1234_v40 = vadd.f32 %v1233_v33, %v1106_v28  ;;  %v601_v28 = vsub.f32 %v345_v16, %v473_v17  ;;  %v863_v33 = vadd.s32 %v1947_v3, %v733_v18  ;;  %v1116_v36 = vsel %vm988_vm9, %v600_v21, 0.0  ;;  %v354_v17 = vld [vmem:[%s1937_s20 + $0x298] sm:$0xff] }
 0x105   : > { %vm990_vm11 = vcmp.lt.s32.totalorder %v862_v26, 1600  ;;  %v482_v18 = vld [vmem:[%s1931_s18 + $0x298] sm:$0xff]  ;;  %v743_v26 = vadd.s32 688, %v1943_v1 }
 0x106   : > { %v1235_v47 = vadd.f32 %v1234_v40, %v1107_v35  ;;  %v602_v35 = vsub.f32 %v346_v23, %v474_v24  ;;  %v864_v40 = vadd.s32 %v1947_v3, %v734_v25  ;;  %v1117_v43 = vsel %vm989_vm10, %v601_v28, 0.0  ;;  %v355_v24 = vld [vmem:[%s1937_s20 + $0x2a0] sm:$0xff] }
 0x107   : > { %vm991_vm12 = vcmp.lt.s32.totalorder %v863_v33, 1600  ;;  %v483_v25 = vld [vmem:[%s1931_s18 + $0x2a0] sm:$0xff]  ;;  %v744_v33 = vadd.s32 696, %v1943_v1 }
 0x108   : > { %v1236_v54 = vadd.f32 %v1235_v47, %v1108_v42  ;;  %v603_v42 = vsub.f32 %v347_v30, %v475_v31  ;;  %v865_v47 = vadd.s32 %v1947_v3, %v735_v32  ;;  %v1118_v50 = vsel %vm990_vm11, %v602_v35, 0.0  ;;  %v356_v31 = vld [vmem:[%s1937_s20 + $0x2a8] sm:$0xff] }
 0x109   : > { %vm992_vm13 = vcmp.lt.s32.totalorder %v864_v40, 1600  ;;  %v484_v32 = vld [vmem:[%s1931_s18 + $0x2a8] sm:$0xff]  ;;  %v745_v40 = vadd.s32 704, %v1943_v1 }
 0x10a   : > { %v1237_v61 = vadd.f32 %v1236_v54, %v1109_v49  ;;  %v604_v49 = vsub.f32 %v348_v37, %v476_v38  ;;  %v866_v54 = vadd.s32 %v1947_v3, %v736_v39  ;;  %v1119_v57 = vsel %vm991_vm12, %v603_v42, 0.0  ;;  %v357_v38 = vld [vmem:[%s1937_s20 + $0x2b0] sm:$0xff] }
 0x10b   : > { %vm993_vm14 = vcmp.lt.s32.totalorder %v865_v47, 1600  ;;  %v485_v39 = vld [vmem:[%s1931_s18 + $0x2b0] sm:$0xff]  ;;  %v746_v47 = vadd.s32 712, %v1943_v1 }
 0x10c   : > { %v1238_v6 = vadd.f32 %v1237_v61, %v1110_v56  ;;  %v605_v56 = vsub.f32 %v349_v44, %v477_v45  ;;  %v867_v61 = vadd.s32 %v1947_v3, %v737_v46  ;;  %v1120_v0 = vsel %vm992_vm13, %v604_v49, 0.0  ;;  %v358_v45 = vld [vmem:[%s1937_s20 + $0x2b8] sm:$0xff] }
 0x10d   : > { %vm994_vm15 = vcmp.lt.s32.totalorder %v866_v54, 1600  ;;  %v486_v46 = vld [vmem:[%s1931_s18 + $0x2b8] sm:$0xff]  ;;  %v747_v54 = vadd.s32 720, %v1943_v1 }
 0x10e   : > { %v1239_v13 = vadd.f32 %v1238_v6, %v1111_v63  ;;  %v606_v63 = vsub.f32 %v350_v51, %v478_v52  ;;  %v868_v6 = vadd.s32 %v1947_v3, %v738_v53  ;;  %v1121_v9 = vsel %vm993_vm14, %v605_v56, 0.0  ;;  %v359_v52 = vld [vmem:[%s1937_s20 + $0x2c0] sm:$0xff] }
 0x10f   : > { %vm995_vm0 = vcmp.lt.s32.totalorder %v867_v61, 1600  ;;  %v487_v53 = vld [vmem:[%s1931_s18 + $0x2c0] sm:$0xff]  ;;  %v748_v61 = vadd.s32 728, %v1943_v1 }
 0x110   : > { %v1240_v20 = vadd.f32 %v1239_v13, %v1112_v8  ;;  %v607_v8 = vsub.f32 %v351_v58, %v479_v59  ;;  %v869_v13 = vadd.s32 %v1947_v3, %v739_v60  ;;  %v1122_v16 = vsel %vm994_vm15, %v606_v63, 0.0  ;;  %v360_v59 = vld [vmem:[%s1937_s20 + $0x2c8] sm:$0xff] }
 0x111   : > { %vm996_vm1 = vcmp.lt.s32.totalorder %v868_v6, 1600  ;;  %v488_v60 = vld [vmem:[%s1931_s18 + $0x2c8] sm:$0xff]  ;;  %v749_v6 = vadd.s32 736, %v1943_v1 }
 0x112   : > { %v1241_v27 = vadd.f32 %v1240_v20, %v1113_v15  ;;  %v608_v15 = vsub.f32 %v352_v2, %v480_v4  ;;  %v870_v20 = vadd.s32 %v1947_v3, %v740_v5  ;;  %v1123_v23 = vsel %vm995_vm0, %v607_v8, 0.0  ;;  %v361_v4 = vld [vmem:[%s1937_s20 + $0x2d0] sm:$0xff] }
 0x113   : > { %vm997_vm2 = vcmp.lt.s32.totalorder %v869_v13, 1600  ;;  %v489_v5 = vld [vmem:[%s1931_s18 + $0x2d0] sm:$0xff]  ;;  %v750_v13 = vadd.s32 744, %v1943_v1 }
 0x114   : > { %v1242_v34 = vadd.f32 %v1241_v27, %v1114_v22  ;;  %v609_v22 = vsub.f32 %v353_v10, %v481_v11  ;;  %v871_v27 = vadd.s32 %v1947_v3, %v741_v12  ;;  %v1124_v30 = vsel %vm996_vm1, %v608_v15, 0.0  ;;  %v362_v11 = vld [vmem:[%s1937_s20 + $0x2d8] sm:$0xff] }
 0x115   : > { %vm998_vm3 = vcmp.lt.s32.totalorder %v870_v20, 1600  ;;  %v490_v12 = vld [vmem:[%s1931_s18 + $0x2d8] sm:$0xff]  ;;  %v751_v20 = vadd.s32 752, %v1943_v1 }
 0x116   : > { %v1243_v41 = vadd.f32 %v1242_v34, %v1115_v29  ;;  %v610_v29 = vsub.f32 %v354_v17, %v482_v18  ;;  %v872_v34 = vadd.s32 %v1947_v3, %v742_v19  ;;  %v1125_v37 = vsel %vm997_vm2, %v609_v22, 0.0  ;;  %v363_v18 = vld [vmem:[%s1937_s20 + $0x2e0] sm:$0xff] }
 0x117   : > { %vm999_vm4 = vcmp.lt.s32.totalorder %v871_v27, 1600  ;;  %v491_v19 = vld [vmem:[%s1931_s18 + $0x2e0] sm:$0xff]  ;;  %v752_v27 = vadd.s32 760, %v1943_v1 }
 0x118   : > { %v1244_v48 = vadd.f32 %v1243_v41, %v1116_v36  ;;  %v611_v36 = vsub.f32 %v355_v24, %v483_v25  ;;  %v873_v41 = vadd.s32 %v1947_v3, %v743_v26  ;;  %v1126_v44 = vsel %vm998_vm3, %v610_v29, 0.0  ;;  %v364_v25 = vld [vmem:[%s1937_s20 + $0x2e8] sm:$0xff] }
 0x119   : > { %vm1000_vm5 = vcmp.lt.s32.totalorder %v872_v34, 1600  ;;  %v492_v26 = vld [vmem:[%s1931_s18 + $0x2e8] sm:$0xff]  ;;  %v753_v34 = vadd.s32 768, %v1943_v1 }
 0x11a   : > { %v1245_v55 = vadd.f32 %v1244_v48, %v1117_v43  ;;  %v612_v43 = vsub.f32 %v356_v31, %v484_v32  ;;  %v874_v48 = vadd.s32 %v1947_v3, %v744_v33  ;;  %v1127_v51 = vsel %vm999_vm4, %v611_v36, 0.0  ;;  %v365_v32 = vld [vmem:[%s1937_s20 + $0x2f0] sm:$0xff] }
 0x11b   : > { %vm1001_vm6 = vcmp.lt.s32.totalorder %v873_v41, 1600  ;;  %v493_v33 = vld [vmem:[%s1931_s18 + $0x2f0] sm:$0xff]  ;;  %v754_v41 = vadd.s32 776, %v1943_v1 }
 0x11c   : > { %v1246_v62 = vadd.f32 %v1245_v55, %v1118_v50  ;;  %v613_v50 = vsub.f32 %v357_v38, %v485_v39  ;;  %v875_v55 = vadd.s32 %v1947_v3, %v745_v40  ;;  %v1128_v58 = vsel %vm1000_vm5, %v612_v43, 0.0  ;;  %v366_v39 = vld [vmem:[%s1937_s20 + $0x2f8] sm:$0xff] }
 0x11d   : > { %vm1002_vm7 = vcmp.lt.s32.totalorder %v874_v48, 1600  ;;  %v494_v40 = vld [vmem:[%s1931_s18 + $0x2f8] sm:$0xff]  ;;  %v755_v48 = vadd.s32 784, %v1943_v1 }
 0x11e   : > { %v1247_v7 = vadd.f32 %v1246_v62, %v1119_v57  ;;  %v614_v57 = vsub.f32 %v358_v45, %v486_v46  ;;  %v876_v62 = vadd.s32 %v1947_v3, %v746_v47  ;;  %v1129_v2 = vsel %vm1001_vm6, %v613_v50, 0.0  ;;  %v367_v46 = vld [vmem:[%s1937_s20 + $0x300] sm:$0xff] }
 0x11f   : > { %vm1003_vm8 = vcmp.lt.s32.totalorder %v875_v55, 1600  ;;  %v495_v47 = vld [vmem:[%s1931_s18 + $0x300] sm:$0xff]  ;;  %v756_v55 = vadd.s32 792, %v1943_v1 }
 0x120   : > { %v1248_v14 = vadd.f32 %v1247_v7, %v1120_v0  ;;  %v615_v0 = vsub.f32 %v359_v52, %v487_v53  ;;  %v877_v7 = vadd.s32 %v1947_v3, %v747_v54  ;;  %v1130_v10 = vsel %vm1002_vm7, %v614_v57, 0.0  ;;  %v368_v53 = vld [vmem:[%s1937_s20 + $0x308] sm:$0xff] }
 0x121   : > { %vm1004_vm9 = vcmp.lt.s32.totalorder %v876_v62, 1600  ;;  %v496_v54 = vld [vmem:[%s1931_s18 + $0x308] sm:$0xff]  ;;  %v757_v62 = vadd.s32 800, %v1943_v1 }
 0x122   : > { %v1249_v21 = vadd.f32 %v1248_v14, %v1121_v9  ;;  %v616_v9 = vsub.f32 %v360_v59, %v488_v60  ;;  %v878_v14 = vadd.s32 %v1947_v3, %v748_v61  ;;  %v1131_v17 = vsel %vm1003_vm8, %v615_v0, 0.0  ;;  %v369_v60 = vld [vmem:[%s1937_s20 + $0x310] sm:$0xff] }
 0x123   : > { %vm1005_vm10 = vcmp.lt.s32.totalorder %v877_v7, 1600  ;;  %v497_v61 = vld [vmem:[%s1931_s18 + $0x310] sm:$0xff]  ;;  %v758_v7 = vadd.s32 808, %v1943_v1 }
 0x124   : > { %v1250_v28 = vadd.f32 %v1249_v21, %v1122_v16  ;;  %v617_v16 = vsub.f32 %v361_v4, %v489_v5  ;;  %v879_v21 = vadd.s32 %v1947_v3, %v749_v6  ;;  %v1132_v24 = vsel %vm1004_vm9, %v616_v9, 0.0  ;;  %v370_v5 = vld [vmem:[%s1937_s20 + $0x318] sm:$0xff] }
 0x125   : > { %vm1006_vm11 = vcmp.lt.s32.totalorder %v878_v14, 1600  ;;  %v498_v6 = vld [vmem:[%s1931_s18 + $0x318] sm:$0xff]  ;;  %v759_v14 = vadd.s32 816, %v1943_v1 }
 0x126   : > { %v1251_v35 = vadd.f32 %v1250_v28, %v1123_v23  ;;  %v618_v23 = vsub.f32 %v362_v11, %v490_v12  ;;  %v880_v28 = vadd.s32 %v1947_v3, %v750_v13  ;;  %v1133_v31 = vsel %vm1005_vm10, %v617_v16, 0.0  ;;  %v371_v12 = vld [vmem:[%s1937_s20 + $0x320] sm:$0xff] }
 0x127   : > { %vm1007_vm12 = vcmp.lt.s32.totalorder %v879_v21, 1600  ;;  %v499_v13 = vld [vmem:[%s1931_s18 + $0x320] sm:$0xff]  ;;  %v760_v21 = vadd.s32 824, %v1943_v1 }
 0x128   : > { %v1252_v42 = vadd.f32 %v1251_v35, %v1124_v30  ;;  %v619_v30 = vsub.f32 %v363_v18, %v491_v19  ;;  %v881_v35 = vadd.s32 %v1947_v3, %v751_v20  ;;  %v1134_v38 = vsel %vm1006_vm11, %v618_v23, 0.0  ;;  %v372_v19 = vld [vmem:[%s1937_s20 + $0x328] sm:$0xff] }
 0x129   : > { %vm1008_vm13 = vcmp.lt.s32.totalorder %v880_v28, 1600  ;;  %v500_v20 = vld [vmem:[%s1931_s18 + $0x328] sm:$0xff]  ;;  %v761_v28 = vadd.s32 832, %v1943_v1 }
 0x12a   : > { %v1253_v49 = vadd.f32 %v1252_v42, %v1125_v37  ;;  %v620_v37 = vsub.f32 %v364_v25, %v492_v26  ;;  %v882_v42 = vadd.s32 %v1947_v3, %v752_v27  ;;  %v1135_v45 = vsel %vm1007_vm12, %v619_v30, 0.0  ;;  %v373_v26 = vld [vmem:[%s1937_s20 + $0x330] sm:$0xff] }
 0x12b   : > { %vm1009_vm14 = vcmp.lt.s32.totalorder %v881_v35, 1600  ;;  %v501_v27 = vld [vmem:[%s1931_s18 + $0x330] sm:$0xff]  ;;  %v762_v35 = vadd.s32 840, %v1943_v1 }
 0x12c   : > { %v1254_v56 = vadd.f32 %v1253_v49, %v1126_v44  ;;  %v621_v44 = vsub.f32 %v365_v32, %v493_v33  ;;  %v883_v49 = vadd.s32 %v1947_v3, %v753_v34  ;;  %v1136_v52 = vsel %vm1008_vm13, %v620_v37, 0.0  ;;  %v374_v33 = vld [vmem:[%s1937_s20 + $0x338] sm:$0xff] }
 0x12d   : > { %vm1010_vm15 = vcmp.lt.s32.totalorder %v882_v42, 1600  ;;  %v502_v34 = vld [vmem:[%s1931_s18 + $0x338] sm:$0xff]  ;;  %v763_v42 = vadd.s32 848, %v1943_v1 }
 0x12e   : > { %v1255_v63 = vadd.f32 %v1254_v56, %v1127_v51  ;;  %v622_v51 = vsub.f32 %v366_v39, %v494_v40  ;;  %v884_v56 = vadd.s32 %v1947_v3, %v754_v41  ;;  %v1137_v59 = vsel %vm1009_vm14, %v621_v44, 0.0  ;;  %v375_v40 = vld [vmem:[%s1937_s20 + $0x340] sm:$0xff] }
 0x12f   : > { %vm1011_vm0 = vcmp.lt.s32.totalorder %v883_v49, 1600  ;;  %v503_v41 = vld [vmem:[%s1931_s18 + $0x340] sm:$0xff]  ;;  %v764_v49 = vadd.s32 856, %v1943_v1 }
 0x130   : > { %v1256_v8 = vadd.f32 %v1255_v63, %v1128_v58  ;;  %v623_v58 = vsub.f32 %v367_v46, %v495_v47  ;;  %v885_v63 = vadd.s32 %v1947_v3, %v755_v48  ;;  %v1138_v4 = vsel %vm1010_vm15, %v622_v51, 0.0  ;;  %v376_v47 = vld [vmem:[%s1937_s20 + $0x348] sm:$0xff] }
 0x131   : > { %vm1012_vm1 = vcmp.lt.s32.totalorder %v884_v56, 1600  ;;  %v504_v48 = vld [vmem:[%s1931_s18 + $0x348] sm:$0xff]  ;;  %v765_v56 = vadd.s32 864, %v1943_v1 }
 0x132   : > { %v1257_v15 = vadd.f32 %v1256_v8, %v1129_v2  ;;  %v624_v2 = vsub.f32 %v368_v53, %v496_v54  ;;  %v886_v8 = vadd.s32 %v1947_v3, %v756_v55  ;;  %v1139_v11 = vsel %vm1011_vm0, %v623_v58, 0.0  ;;  %v377_v54 = vld [vmem:[%s1937_s20 + $0x350] sm:$0xff] }
 0x133   : > { %vm1013_vm2 = vcmp.lt.s32.totalorder %v885_v63, 1600  ;;  %v505_v55 = vld [vmem:[%s1931_s18 + $0x350] sm:$0xff]  ;;  %v766_v63 = vadd.s32 872, %v1943_v1 }
 0x134   : > { %v1258_v22 = vadd.f32 %v1257_v15, %v1130_v10  ;;  %v625_v10 = vsub.f32 %v369_v60, %v497_v61  ;;  %v887_v15 = vadd.s32 %v1947_v3, %v757_v62  ;;  %v1140_v18 = vsel %vm1012_vm1, %v624_v2, 0.0  ;;  %v378_v61 = vld [vmem:[%s1937_s20 + $0x358] sm:$0xff] }
 0x135   : > { %vm1014_vm3 = vcmp.lt.s32.totalorder %v886_v8, 1600  ;;  %v506_v62 = vld [vmem:[%s1931_s18 + $0x358] sm:$0xff]  ;;  %v767_v8 = vadd.s32 880, %v1943_v1 }
 0x136   : > { %v1259_v29 = vadd.f32 %v1258_v22, %v1131_v17  ;;  %v626_v17 = vsub.f32 %v370_v5, %v498_v6  ;;  %v888_v22 = vadd.s32 %v1947_v3, %v758_v7  ;;  %v1141_v25 = vsel %vm1013_vm2, %v625_v10, 0.0  ;;  %v379_v6 = vld [vmem:[%s1937_s20 + $0x360] sm:$0xff] }
 0x137   : > { %vm1015_vm4 = vcmp.lt.s32.totalorder %v887_v15, 1600  ;;  %v507_v7 = vld [vmem:[%s1931_s18 + $0x360] sm:$0xff]  ;;  %v768_v15 = vadd.s32 888, %v1943_v1 }
 0x138   : > { %v1260_v36 = vadd.f32 %v1259_v29, %v1132_v24  ;;  %v627_v24 = vsub.f32 %v371_v12, %v499_v13  ;;  %v889_v29 = vadd.s32 %v1947_v3, %v759_v14  ;;  %v1142_v32 = vsel %vm1014_vm3, %v626_v17, 0.0  ;;  %v380_v13 = vld [vmem:[%s1937_s20 + $0x368] sm:$0xff] }
 0x139   : > { %vm1016_vm5 = vcmp.lt.s32.totalorder %v888_v22, 1600  ;;  %v508_v14 = vld [vmem:[%s1931_s18 + $0x368] sm:$0xff]  ;;  %v769_v22 = vadd.s32 896, %v1943_v1 }
 0x13a   : > { %v1261_v43 = vadd.f32 %v1260_v36, %v1133_v31  ;;  %v628_v31 = vsub.f32 %v372_v19, %v500_v20  ;;  %v890_v36 = vadd.s32 %v1947_v3, %v760_v21  ;;  %v1143_v39 = vsel %vm1015_vm4, %v627_v24, 0.0  ;;  %v381_v20 = vld [vmem:[%s1937_s20 + $0x370] sm:$0xff] }
 0x13b   : > { %vm1017_vm6 = vcmp.lt.s32.totalorder %v889_v29, 1600  ;;  %v509_v21 = vld [vmem:[%s1931_s18 + $0x370] sm:$0xff]  ;;  %v770_v29 = vadd.s32 904, %v1943_v1 }
 0x13c   : > { %v1262_v50 = vadd.f32 %v1261_v43, %v1134_v38  ;;  %v629_v38 = vsub.f32 %v373_v26, %v501_v27  ;;  %v891_v43 = vadd.s32 %v1947_v3, %v761_v28  ;;  %v1144_v46 = vsel %vm1016_vm5, %v628_v31, 0.0  ;;  %v382_v27 = vld [vmem:[%s1937_s20 + $0x378] sm:$0xff] }
 0x13d   : > { %vm1018_vm7 = vcmp.lt.s32.totalorder %v890_v36, 1600  ;;  %v510_v28 = vld [vmem:[%s1931_s18 + $0x378] sm:$0xff]  ;;  %v771_v36 = vadd.s32 912, %v1943_v1 }
 0x13e   : > { %v1263_v57 = vadd.f32 %v1262_v50, %v1135_v45  ;;  %v630_v45 = vsub.f32 %v374_v33, %v502_v34  ;;  %v892_v50 = vadd.s32 %v1947_v3, %v762_v35  ;;  %v1145_v53 = vsel %vm1017_vm6, %v629_v38, 0.0  ;;  %v383_v34 = vld [vmem:[%s1937_s20 + $0x380] sm:$0xff] }
 0x13f   : > { %vm1019_vm8 = vcmp.lt.s32.totalorder %v891_v43, 1600  ;;  %v511_v35 = vld [vmem:[%s1931_s18 + $0x380] sm:$0xff]  ;;  %v772_v43 = vadd.s32 920, %v1943_v1 }
 0x140   : > { %v1264_v0 = vadd.f32 %v1263_v57, %v1136_v52  ;;  %v631_v52 = vsub.f32 %v375_v40, %v503_v41  ;;  %v893_v57 = vadd.s32 %v1947_v3, %v763_v42  ;;  %v1146_v60 = vsel %vm1018_vm7, %v630_v45, 0.0  ;;  %v384_v41 = vld [vmem:[%s1937_s20 + $0x388] sm:$0xff] }
 0x141   : > { %vm1020_vm9 = vcmp.lt.s32.totalorder %v892_v50, 1600  ;;  %v512_v42 = vld [vmem:[%s1931_s18 + $0x388] sm:$0xff]  ;;  %v773_v50 = vadd.s32 928, %v1943_v1 }
 0x142   : > { %v1265_v9 = vadd.f32 %v1264_v0, %v1137_v59  ;;  %v632_v59 = vsub.f32 %v376_v47, %v504_v48  ;;  %v894_v0 = vadd.s32 %v1947_v3, %v764_v49  ;;  %v1147_v5 = vsel %vm1019_vm8, %v631_v52, 0.0  ;;  %v385_v48 = vld [vmem:[%s1937_s20 + $0x390] sm:$0xff] }
 0x143   : > { %vm1021_vm10 = vcmp.lt.s32.totalorder %v893_v57, 1600  ;;  %v513_v49 = vld [vmem:[%s1931_s18 + $0x390] sm:$0xff]  ;;  %v774_v57 = vadd.s32 936, %v1943_v1 }
 0x144   : > { %v1266_v16 = vadd.f32 %v1265_v9, %v1138_v4  ;;  %v633_v4 = vsub.f32 %v377_v54, %v505_v55  ;;  %v895_v9 = vadd.s32 %v1947_v3, %v765_v56  ;;  %v1148_v12 = vsel %vm1020_vm9, %v632_v59, 0.0  ;;  %v386_v55 = vld [vmem:[%s1937_s20 + $0x398] sm:$0xff] }
 0x145   : > { %vm1022_vm11 = vcmp.lt.s32.totalorder %v894_v0, 1600  ;;  %v514_v56 = vld [vmem:[%s1931_s18 + $0x398] sm:$0xff]  ;;  %v775_v0 = vadd.s32 944, %v1943_v1 }
 0x146   : > { %v1267_v23 = vadd.f32 %v1266_v16, %v1139_v11  ;;  %v634_v11 = vsub.f32 %v378_v61, %v506_v62  ;;  %v896_v16 = vadd.s32 %v1947_v3, %v766_v63  ;;  %v1149_v19 = vsel %vm1021_vm10, %v633_v4, 0.0  ;;  %v387_v62 = vld [vmem:[%s1937_s20 + $0x3a0] sm:$0xff] }
 0x147   : > { %vm1023_vm12 = vcmp.lt.s32.totalorder %v895_v9, 1600  ;;  %v515_v63 = vld [vmem:[%s1931_s18 + $0x3a0] sm:$0xff]  ;;  %v776_v9 = vadd.s32 952, %v1943_v1 }
 0x148   : > { %v1268_v30 = vadd.f32 %v1267_v23, %v1140_v18  ;;  %v635_v18 = vsub.f32 %v379_v6, %v507_v7  ;;  %v897_v23 = vadd.s32 %v1947_v3, %v767_v8  ;;  %v1150_v26 = vsel %vm1022_vm11, %v634_v11, 0.0  ;;  %v388_v7 = vld [vmem:[%s1937_s20 + $0x3a8] sm:$0xff] }
 0x149   : > { %vm1024_vm13 = vcmp.lt.s32.totalorder %v896_v16, 1600  ;;  %v516_v8 = vld [vmem:[%s1931_s18 + $0x3a8] sm:$0xff]  ;;  %v777_v16 = vadd.s32 960, %v1943_v1 }
 0x14a   : > { %v1269_v37 = vadd.f32 %v1268_v30, %v1141_v25  ;;  %v636_v25 = vsub.f32 %v380_v13, %v508_v14  ;;  %v898_v30 = vadd.s32 %v1947_v3, %v768_v15  ;;  %v1151_v33 = vsel %vm1023_vm12, %v635_v18, 0.0  ;;  %v389_v14 = vld [vmem:[%s1937_s20 + $0x3b0] sm:$0xff] }
 0x14b   : > { %vm1025_vm14 = vcmp.lt.s32.totalorder %v897_v23, 1600  ;;  %v517_v15 = vld [vmem:[%s1931_s18 + $0x3b0] sm:$0xff]  ;;  %v778_v23 = vadd.s32 968, %v1943_v1 }
 0x14c   : > { %v1270_v44 = vadd.f32 %v1269_v37, %v1142_v32  ;;  %v637_v32 = vsub.f32 %v381_v20, %v509_v21  ;;  %v899_v37 = vadd.s32 %v1947_v3, %v769_v22  ;;  %v1152_v40 = vsel %vm1024_vm13, %v636_v25, 0.0  ;;  %v390_v21 = vld [vmem:[%s1937_s20 + $0x3b8] sm:$0xff] }
 0x14d   : > { %vm1026_vm15 = vcmp.lt.s32.totalorder %v898_v30, 1600  ;;  %v518_v22 = vld [vmem:[%s1931_s18 + $0x3b8] sm:$0xff]  ;;  %v779_v30 = vadd.s32 976, %v1943_v1 }
 0x14e   : > { %v1271_v51 = vadd.f32 %v1270_v44, %v1143_v39  ;;  %v638_v39 = vsub.f32 %v382_v27, %v510_v28  ;;  %v900_v44 = vadd.s32 %v1947_v3, %v770_v29  ;;  %v1153_v47 = vsel %vm1025_vm14, %v637_v32, 0.0  ;;  %v391_v28 = vld [vmem:[%s1937_s20 + $0x3c0] sm:$0xff] }
 0x14f   : > { %vm1027_vm0 = vcmp.lt.s32.totalorder %v899_v37, 1600  ;;  %v519_v29 = vld [vmem:[%s1931_s18 + $0x3c0] sm:$0xff]  ;;  %v780_v37 = vadd.s32 984, %v1943_v1 }
 0x150   : > { %v1272_v58 = vadd.f32 %v1271_v51, %v1144_v46  ;;  %v639_v46 = vsub.f32 %v383_v34, %v511_v35  ;;  %v901_v51 = vadd.s32 %v1947_v3, %v771_v36  ;;  %v1154_v54 = vsel %vm1026_vm15, %v638_v39, 0.0  ;;  %v392_v35 = vld [vmem:[%s1937_s20 + $0x3c8] sm:$0xff] }
 0x151   : > { %vm1028_vm1 = vcmp.lt.s32.totalorder %v900_v44, 1600  ;;  %v520_v36 = vld [vmem:[%s1931_s18 + $0x3c8] sm:$0xff]  ;;  %v781_v44 = vadd.s32 992, %v1943_v1 }
 0x152   : > { %v1273_v2 = vadd.f32 %v1272_v58, %v1145_v53  ;;  %v640_v53 = vsub.f32 %v384_v41, %v512_v42  ;;  %v902_v58 = vadd.s32 %v1947_v3, %v772_v43  ;;  %v1155_v61 = vsel %vm1027_vm0, %v639_v46, 0.0  ;;  %v393_v42 = vld [vmem:[%s1937_s20 + $0x3d0] sm:$0xff] }
 0x153   : > { %vm1029_vm2 = vcmp.lt.s32.totalorder %v901_v51, 1600  ;;  %v521_v43 = vld [vmem:[%s1931_s18 + $0x3d0] sm:$0xff]  ;;  %v782_v51 = vadd.s32 1000, %v1943_v1 }
 0x154   : > { %v1274_v10 = vadd.f32 %v1273_v2, %v1146_v60  ;;  %v641_v60 = vsub.f32 %v385_v48, %v513_v49  ;;  %v903_v2 = vadd.s32 %v1947_v3, %v773_v50  ;;  %v1156_v6 = vsel %vm1028_vm1, %v640_v53, 0.0  ;;  %v394_v49 = vld [vmem:[%s1937_s20 + $0x3d8] sm:$0xff] }
 0x155   : > { %vm1030_vm3 = vcmp.lt.s32.totalorder %v902_v58, 1600  ;;  %v522_v50 = vld [vmem:[%s1931_s18 + $0x3d8] sm:$0xff]  ;;  %v783_v58 = vadd.s32 1008, %v1943_v1 }
 0x156   : > { %v1275_v17 = vadd.f32 %v1274_v10, %v1147_v5  ;;  %v642_v5 = vsub.f32 %v386_v55, %v514_v56  ;;  %v904_v10 = vadd.s32 %v1947_v3, %v774_v57  ;;  %v1157_v13 = vsel %vm1029_vm2, %v641_v60, 0.0  ;;  %v395_v56 = vld [vmem:[%s1937_s20 + $0x3e0] sm:$0xff] }
 0x157   : > { %vm1031_vm4 = vcmp.lt.s32.totalorder %v903_v2, 1600  ;;  %v523_v57 = vld [vmem:[%s1931_s18 + $0x3e0] sm:$0xff]  ;;  %v784_v2 = vadd.s32 1016, %v1943_v1 }
 0x158   : > { %v1276_v24 = vadd.f32 %v1275_v17, %v1148_v12  ;;  %v643_v12 = vsub.f32 %v387_v62, %v515_v63  ;;  %v905_v17 = vadd.s32 %v1947_v3, %v775_v0  ;;  %v1158_v20 = vsel %vm1030_vm3, %v642_v5, 0.0  ;;  %v396_v63 = vld [vmem:[%s1937_s20 + $0x3e8] sm:$0xff] }
 0x159   : > { %vm1032_vm5 = vcmp.lt.s32.totalorder %v904_v10, 1600  ;;  %v524_v0 = vld [vmem:[%s1931_s18 + $0x3e8] sm:$0xff]  ;;  %v913_v10 = vadd.s32 %v1947_v3, %v783_v58  ;;  %v914_v1 = vadd.s32 %v1947_v3, %v784_v2 }
 0x15a   : > { %v1277_v31 = vadd.f32 %v1276_v24, %v1149_v19  ;;  %v644_v19 = vsub.f32 %v388_v7, %v516_v8  ;;  %v906_v24 = vadd.s32 %v1947_v3, %v776_v9  ;;  %v1159_v27 = vsel %vm1031_vm4, %v643_v12, 0.0  ;;  %v397_v8 = vld [vmem:[%s1937_s20 + $0x3f0] sm:$0xff] }
 0x15b   : > { %vm1033_vm6 = vcmp.lt.s32.totalorder %v905_v17, 1600  ;;  %v525_v9 = vld [vmem:[%s1931_s18 + $0x3f0] sm:$0xff]  ;;  %v652_v12 = vsub.f32 %v396_v63, %v524_v0  ;;  %vm1041_vm14 = vcmp.lt.s32.totalorder %v913_v10, 1600  ;;  %vm1042_vm15 = vcmp.lt.s32.totalorder %v914_v1, 1600 }
 0x15c   : > { %v1278_v38 = vadd.f32 %v1277_v31, %v1150_v26  ;;  %v645_v26 = vsub.f32 %v389_v14, %v517_v15  ;;  %v907_v31 = vadd.s32 %v1947_v3, %v777_v16  ;;  %v1160_v34 = vsel %vm1032_vm5, %v644_v19, 0.0  ;;  %v398_v14 = vld [vmem:[%s1937_s20 + $0x3f8] sm:$0xff] }
 0x15d   : > { %vm1034_vm7 = vcmp.lt.s32.totalorder %v906_v24, 1600  ;;  %v526_v15 = vld [vmem:[%s1931_s18 + $0x3f8] sm:$0xff]  ;;  %v653_v17 = vsub.f32 %v397_v8, %v525_v9 }
 0x15e   : > { %v1279_v45 = vadd.f32 %v1278_v38, %v1151_v33  ;;  %v646_v33 = vsub.f32 %v390_v21, %v518_v22  ;;  %v908_v38 = vadd.s32 %v1947_v3, %v778_v23  ;;  %v1161_v41 = vsel %vm1033_vm6, %v645_v26, 0.0 }
 0x15f   : > { %vm1035_vm8 = vcmp.lt.s32.totalorder %v907_v31, 1600  ;;  %v1169_v23 = vsel %vm1041_vm14, %v653_v17, 0.0 }
 0x160   : > { %v1280_v52 = vadd.f32 %v1279_v45, %v1152_v40  ;;  %v647_v40 = vsub.f32 %v391_v28, %v519_v29  ;;  %v909_v45 = vadd.s32 %v1947_v3, %v779_v30  ;;  %v1162_v48 = vsel %vm1034_vm7, %v646_v33, 0.0 }
 0x161   : > { %vm1036_vm9 = vcmp.lt.s32.totalorder %v908_v38, 1600 }
 0x162   : > { %v1281_v59 = vadd.f32 %v1280_v52, %v1153_v47  ;;  %v648_v47 = vsub.f32 %v392_v35, %v520_v36  ;;  %v910_v52 = vadd.s32 %v1947_v3, %v780_v37  ;;  %v1163_v55 = vsel %vm1035_vm8, %v647_v40, 0.0 }
 0x163   : > { %vm1037_vm10 = vcmp.lt.s32.totalorder %v909_v45, 1600 }
 0x164   : > { %v1282_v4 = vadd.f32 %v1281_v59, %v1154_v54  ;;  %v649_v54 = vsub.f32 %v393_v42, %v521_v43  ;;  %v911_v59 = vadd.s32 %v1947_v3, %v781_v44  ;;  %v1164_v62 = vsel %vm1036_vm9, %v648_v47, 0.0 }
 0x165   : > { %vm1038_vm11 = vcmp.lt.s32.totalorder %v910_v52, 1600 }
 0x166   : > { %v1283_v11 = vadd.f32 %v1282_v4, %v1155_v61  ;;  %v650_v61 = vsub.f32 %v394_v49, %v522_v50  ;;  %v912_v4 = vadd.s32 %v1947_v3, %v782_v51  ;;  %v1165_v7 = vsel %vm1037_vm10, %v649_v54, 0.0 }
 0x167   : > { %vm1039_vm12 = vcmp.lt.s32.totalorder %v911_v59, 1600 }
 0x168   : > { %v1284_v18 = vadd.f32 %v1283_v11, %v1156_v6  ;;  %v651_v6 = vsub.f32 %v395_v56, %v523_v57  ;;  %vm1040_vm13 = vcmp.lt.s32.totalorder %v912_v4, 1600 }
 0x169   : > { %v1168_v21 = vsel %vm1040_vm13, %v652_v12, 0.0 }
 0x16a   : > { %v1285_v25 = vadd.f32 %v1284_v18, %v1157_v13  ;;  %v1166_v13 = vsel %vm1038_vm11, %v650_v61, 0.0  ;;  %v1167_v18 = vsel %vm1039_vm12, %v651_v6, 0.0 }
 0x16c   : > { %v1286_v32 = vadd.f32 %v1285_v25, %v1158_v20  ;;  %v654_v20 = vsub.f32 %v398_v14, %v526_v15 }
 0x16e   : > { %v1287_v39 = vadd.f32 %v1286_v32, %v1159_v27  ;;  %v1170_v24 = vsel %vm1042_vm15, %v654_v20, 0.0 }
 0x170   : > { %v1288_v46 = vadd.f32 %v1287_v39, %v1160_v34 }
 0x172   : > { %v1289_v53 = vadd.f32 %v1288_v46, %v1161_v41 }
 0x174   : > { %v1290_v60 = vadd.f32 %v1289_v53, %v1162_v48 }
 0x176   : > { %v1291_v5 = vadd.f32 %v1290_v60, %v1163_v55 }
 0x178   : > { %v1292_v11 = vadd.f32 %v1291_v5, %v1164_v62 }
 0x17a   : > { %v1293_v16 = vadd.f32 %v1292_v11, %v1165_v7 }
 0x17c   : > { %v1294_v19 = vadd.f32 %v1293_v16, %v1166_v13 }
 0x17e   : > { %v1295_v22 = vadd.f32 %v1294_v19, %v1167_v18 }
 0x180   : > { %v1296_v3 = vadd.f32 %v1295_v22, %v1168_v21 }
 0x182   : > { %v1297_v25 = vadd.f32 %v1296_v3, %v1169_v23 }
 0x184   : > { %v1298_v26 = vadd.f32 %v1297_v25, %v1170_v24 }
 0x186   : > { %1305 = vst [vmem:[%s249_s8] sm:$0xff] %v1298_v26 }
 0x187   : > { %1642 = shalt.err (!%p1639_p10)
}
 0x188   : > { %1454 = dma.vmem_to_hbm [thread:$0]  (%p1829_p1), %s1320_s21, 128, %s1322_s5, %s1307_s15  }
 0x189 PF: > { %s1333_s20 = sand.u32 1, %s1693_s9   ;;  %p1457_p5 = pnand %p1426_p3, %p1833_p2 }
 0x18a   : > { %s1334_s23 = scalar_lea.sflag [#allocation5], %s1333_s20 }
 0x18b   : > { %p1458_p11 = pneg %p1457_p5 }
 0x18d   : > { %1688 = dma.done.wait (%p1458_p11), %s1334_s23, 128  }
 0x18e   : > { %1690 = vsyncadd (%p1458_p11), %s1334_s23, 4294967168  ;;  %s21_s17 = sadd.s32 1, %s1725_s17   ;;  %s2528_s15 = sld [smem:[#allocation12_spill]] }
 0x18f   : > { %p18_p12 = scmp.ge.s32.totalorder %s21_s17, 4   ;;  %s2529_s16 = sld [smem:[#allocation13_spill]] }
 0x190   : > { %s2530_s9 = smov %s1697_s10  ;;  %s2531_s10 = smov %s1701_s11 }
 0x191   : > { %s2532_s11 = smov %s1820_s29  ;;  %s2533_s12 = smov %s1709_s13 }
 0x192   : > { %s2534_s13 = smov %s1713_s14  ;;  %s2535_s14 = smov %s1823_s30 }
 0x193   :  { %20 = sbr.rel (!%p18_p12) target bundleno = 12 (0xc), region = 94 }
 0x198   :  { %1340 = vsyncpa [#allocation4], 1 }
 0x199   :  { %1342 = vsyncpa [#allocation4 + $0x1], 1 }
 0x19a   :  { %1343 = vsyncpa [#allocation7], 1 }
 0x19b   :  { %1345 = vsyncpa [#allocation7 + $0x1], 1 }
 0x19c   :  { %1346 = vsyncpa [#allocation5], 1 }
 0x19d   :  { %1348 = vsyncpa [#allocation5 + $0x1], 1 }

</bundles_post_ra>
